<compile_context>
chip_gen: v6e
topology: v6e:2x2x1
jax: 0.10.0
libtpu: 0.0.40
codegen_flags: <defaults>
</compile_context>

<pallas_src>
import numpy as np
import jax
import jax.numpy as jnp
from jax import lax
from jax.experimental import pallas as pl
from jax.experimental.pallas import tpu as pltpu


def lstm_fc_kernel(xproj0_ref, w_ih_ref, w_hh_ref, b_ref, fc_w_ref, fc_b_ref,
                   out_ref, xproj_buf, seq_buf, h_scr, c_scr):
    """Multi-layer LSTM recurrence + final FC for one batch block.

    xproj0_ref: (T, Bb, 4H) f32  layer-0 input projection (+bias), gates pre-scaled
    w_ih_ref  : (max(L-1,1), H, 4H) bf16  layer>=1 input->gate weights (pre-scaled)
    w_hh_ref  : (L, H, 4H) bf16           hidden->gate weights (pre-scaled)
    b_ref     : (max(L-1,1), 1, 4H) f32   layer>=1 gate bias (pre-scaled)
    fc_w_ref  : (H, C) bf16
    fc_b_ref  : (1, C) f32
    out_ref   : (Bb, C) f32
    xproj_buf : (T, Bb, 4H) f32 scratch — hoisted per-layer input projection
    seq_buf   : (T, Bb, H)  bf16 scratch — layer output sequence (next layer input)
    h_scr     : (Bb, H) f32
    c_scr     : (Bb, H) f32

    Gate order follows PyTorch: i, f, g, o.  The i/f/o columns of all gate
    weights/biases were pre-scaled by 0.5 offline, so sigmoid(x) falls out of
    the single tanh pass as 0.5 * tanh(x/2) + 0.5.
    """
    L = w_hh_ref.shape[0]
    T, Bb, fourH = xproj0_ref.shape
    H = fourH // 4

    time_unroll = True if T <= 16 else 8   # bounded unroll for large T
    proj_unroll = True if T <= 16 else 4

    for layer in range(L):                  # static unroll over layers (L small)
        is_last = layer == L - 1
        w_hh = w_hh_ref[layer]              # (H, 4H) bf16, loop-invariant

        if layer == 0:
            gate_src = xproj0_ref           # layer-0 projection computed in XLA
        else:
            # Hoisted input projection for this layer: no recurrent dependency,
            # so it runs as T back-to-back row-tile matmuls before the serial
            # loop (per-timestep chunks bound vreg pressure at large T).
            w_ih = w_ih_ref[layer - 1]      # (H, 4H) bf16
            bias = b_ref[layer - 1]         # (1, 4H) f32

            def proj(t, carry):
                xproj_buf[t] = (jnp.dot(seq_buf[t], w_ih,
                                        preferred_element_type=jnp.float32)
                                + bias)
                return carry

            lax.fori_loop(0, T, proj, 0, unroll=proj_unroll)
            gate_src = xproj_buf

        # ---- t = 0 peeled: h = c = 0 -> recurrent matmul skipped, f*c == 0.
        th0 = jnp.tanh(gate_src[0])                             # one EUP pass
        c0 = (0.5 * th0[:, 0:H] + 0.5) * th0[:, 2 * H:3 * H]    # i * g
        h0 = (0.5 * th0[:, 3 * H:4 * H] + 0.5) * jnp.tanh(c0)   # o * tanh(c)
        c_scr[...] = c0
        h_scr[...] = h0
        if not is_last:
            seq_buf[0] = h0.astype(jnp.bfloat16)

        # ---- Remaining timesteps: only the (Bb,H)@(H,4H) recurrent matmul and
        #      one tanh over the full gate vreg sit on the serial chain.
        def step(t, carry):
            gates = gate_src[t] + jnp.dot(
                h_scr[...].astype(jnp.bfloat16), w_hh,
                preferred_element_type=jnp.float32)
            th = jnp.tanh(gates)            # single EUP pass; sigmoids on VPU
            c_new = ((0.5 * th[:, H:2 * H] + 0.5) * c_scr[...]
                     + (0.5 * th[:, 0:H] + 0.5) * th[:, 2 * H:3 * H])
            h_new = (0.5 * th[:, 3 * H:4 * H] + 0.5) * jnp.tanh(c_new)
            c_scr[...] = c_new
            h_scr[...] = h_new
            if not is_last:
                seq_buf[t] = h_new.astype(jnp.bfloat16)
            return carry

        lax.fori_loop(1, T, step, 0, unroll=time_unroll)

    # fc(out[:, -1, :]) — h_scr holds the last timestep of the last layer.
    out_ref[...] = (jnp.dot(h_scr[...].astype(jnp.bfloat16), fc_w_ref[...],
                            preferred_element_type=jnp.float32)
                    + fc_b_ref[...])


def _prescale_gates(a, H):
    """Scale the i/f/o gate columns by 0.5 (tanh-only sigmoid trick)."""
    scale = jnp.concatenate([
        jnp.full((H,), 0.5, a.dtype), jnp.full((H,), 0.5, a.dtype),
        jnp.ones((H,), a.dtype), jnp.full((H,), 0.5, a.dtype)])
    return a * scale


def _vmem_limit_bytes(need_bytes):
    """Generation-aware VMEM limit: ~2x footprint, capped below physical VMEM."""
    try:
        cap = pltpu.get_tpu_info().vmem_capacity_bytes
    except Exception:                      # info unavailable -> conservative cap
        cap = 64 * 1024 * 1024
    ceiling = max(cap - 8 * 1024 * 1024, 16 * 1024 * 1024)  # compiler headroom
    return int(min(ceiling, max(16 * 1024 * 1024, 2 * need_bytes)))


def rnn_forward(x, w_ih, w_hh, b, fc_w, fc_b, *, batch_blocks=1):
    """LSTM(num_layers) + Linear forward (eval semantics).  Returns (B, C) logits.

    x    : (B, T, I) batch-first input (PyTorch convention).
    w_ih : list of L arrays; [0] is (I, 4H), layers >= 1 are (H, 4H).
    w_hh : list of L arrays, each (H, 4H).
    b    : list of L arrays, each (1, 4H)   (= b_ih + b_hh, gate order i,f,g,o).
    fc_w : (H, C);  fc_b : (1, C).
    batch_blocks: grid split over batch.  Keep 1 on single-TensorCore chips
      (v5e/v6e); set 2 on v7x (2 TCs) when B % 16 == 0 so each core runs half
      the batch's recurrence in parallel.
    """
    B, T, I = x.shape
    L = len(w_hh)
    H = w_hh[0].shape[0]
    fourH = 4 * H
    C = fc_w.shape[1]

    assert B % batch_blocks == 0
    Bb = B // batch_blocks
    assert Bb == B or Bb % 8 == 0, "batch block must be sublane-aligned"

    # Pre-scale i/f/o gate columns by 0.5 (sigmoid(x) = 0.5*tanh(x/2) + 0.5).
    w_ih_s = [_prescale_gates(w.astype(jnp.float32), H) for w in w_ih]
    w_hh_s = jnp.stack([_prescale_gates(w.astype(jnp.float32), H)
                        for w in w_hh]).astype(jnp.bfloat16)
    b_s = [_prescale_gates(bi.astype(jnp.float32), H) for bi in b]

    # Layer-0 input projection hoisted to XLA (no recurrent dependency):
    # batch-first -> time-major, then one (T*B, I) @ (I, 4H) matmul, bias folded.
    x_tm = jnp.transpose(x, (1, 0, 2)).reshape(T * B, I).astype(jnp.bfloat16)
    xproj0 = (jnp.dot(x_tm, w_ih_s[0].astype(jnp.bfloat16),
                      preferred_element_type=jnp.float32)
              .reshape(T, B, fourH) + b_s[0])                  # (T, B, 4H) f32

    # Hidden-layer (>=1) weights/biases for the kernel (dummy slot when L == 1).
    if L > 1:
        w_ih_h = jnp.stack(w_ih_s[1:]).astype(jnp.bfloat16)    # (L-1, H, 4H)
        b_h = jnp.stack(b_s[1:])                               # (L-1, 1, 4H)
    else:
        w_ih_h = jnp.zeros((1, H, fourH), jnp.bfloat16)
        b_h = jnp.zeros((1, 1, fourH), jnp.float32)

    fc_w_bf = fc_w.astype(jnp.bfloat16)
    fc_b_f = fc_b.astype(jnp.float32)

    inputs = (xproj0, w_ih_h, w_hh_s, b_h, fc_w_bf, fc_b_f)
    need = sum(a.size * a.dtype.itemsize for a in inputs)
    need += (T * Bb * fourH * 4        # xproj_buf scratch (f32)
             + T * Bb * H * 2          # seq_buf scratch (bf16)
             + 2 * Bb * H * 4          # h, c
             + Bb * C * 4)             # output block

    in_specs = [
        pl.BlockSpec((T, Bb, fourH), lambda g: (0, g, 0)),     # xproj0 (batch-sliced)
        pl.BlockSpec(w_ih_h.shape, lambda g: (0, 0, 0)),       # w_ih (layers >= 1)
        pl.BlockSpec(w_hh_s.shape, lambda g: (0, 0, 0)),       # w_hh
        pl.BlockSpec(b_h.shape, lambda g: (0, 0, 0)),          # b    (layers >= 1)
        pl.BlockSpec(fc_w_bf.shape, lambda g: (0, 0)),         # fc_w
        pl.BlockSpec(fc_b_f.shape, lambda g: (0, 0)),          # fc_b
    ]
    out_spec = pl.BlockSpec((Bb, C), lambda g: (g, 0))

    return pl.pallas_call(
        lstm_fc_kernel,
        out_shape=jax.ShapeDtypeStruct((B, C), jnp.float32),
        grid=(batch_blocks,),
        in_specs=in_specs,
        out_specs=out_spec,
        scratch_shapes=[
            pltpu.VMEM((T, Bb, fourH), jnp.float32),   # hoisted projection (+bias)
            pltpu.VMEM((T, Bb, H), jnp.bfloat16),      # layer output sequence
            pltpu.VMEM((Bb, H), jnp.float32),          # h
            pltpu.VMEM((Bb, H), jnp.float32),          # c
        ],
        compiler_params=pltpu.CompilerParams(
            dimension_semantics=("parallel",),
            vmem_limit_bytes=_vmem_limit_bytes(need)),
    )(*inputs)


def ref_forward(x, w_ih, w_hh, b, fc_w, fc_b):
    """Pure-JAX f32 reference (standard sigmoid/tanh gates, loops unrolled)."""
    B, T, _ = x.shape
    L = len(w_hh)
    H = w_hh[0].shape[0]
    layer_in = x.astype(jnp.float32)
    for l in range(L):
        h = jnp.zeros((B, H), jnp.float32)
        c = jnp.zeros((B, H), jnp.float32)
        outs = []
        for t in range(T):
            gates = layer_in[:, t, :] @ w_ih[l] + h @ w_hh[l] + b[l]
            i = jax.nn.sigmoid(gates[:, :H])
            f = jax.nn.sigmoid(gates[:, H:2 * H])
            g = jnp.tanh(gates[:, 2 * H:3 * H])
            o = jax.nn.sigmoid(gates[:, 3 * H:])
            c = f * c + i * g
            h = o * jnp.tanh(c)
            outs.append(h)
        layer_in = jnp.stack(outs, axis=1)
    return layer_in[:, -1, :] @ fc_w + fc_b


if __name__ == "__main__":
    # Small shapes consistent with the module:
    #   input_size=16, hidden_size=32, num_layers=2, num_classes=8
    #   batch=8, seq_len=8
    B, T, I, H, L, C = 8, 8, 16, 32, 2, 8

    key = jax.random.PRNGKey(0)
    ks = jax.random.split(key, 4 * L + 3)
    k_scale = 1.0 / np.sqrt(H)  # PyTorch default uniform(-1/sqrt(H), 1/sqrt(H))

    # Per-layer LSTM weights, pre-transposed to (in, 4H); gate order i, f, g, o.
    w_ih, w_hh, b = [], [], []
    for l in range(L):
        in_l = I if l == 0 else H
        w_ih.append(jax.random.uniform(ks[4 * l + 0], (in_l, 4 * H),
                                       jnp.float32, -k_scale, k_scale))
        w_hh.append(jax.random.uniform(ks[4 * l + 1], (H, 4 * H),
                                       jnp.float32, -k_scale, k_scale))
        b_ih = jax.random.uniform(ks[4 * l + 2], (1, 4 * H),
                                  jnp.float32, -k_scale, k_scale)
        b_hh = jax.random.uniform(ks[4 * l + 3], (1, 4 * H),
                                  jnp.float32, -k_scale, k_scale)
        b.append(b_ih + b_hh)

    # Final Linear(hidden_size, num_classes): torch weight (C, H) -> store (H, C).
    fc_w = jax.random.uniform(ks[4 * L], (H, C), jnp.float32, -k_scale, k_scale)
    fc_b = jax.random.uniform(ks[4 * L + 1], (1, C), jnp.float32, -k_scale, k_scale)

    x = jax.random.normal(ks[4 * L + 2], (B, T, I), jnp.float32)

    out = jax.block_until_ready(rnn_forward(x, w_ih, w_hh, b, fc_w, fc_b))
    ref = jax.block_until_ready(ref_forward(x, w_ih, w_hh, b, fc_w, fc_b))

    assert out.shape == (B, C)
    # bf16 matmul operands (f32 accumulation), bf16 inter-layer sequence and
    # bf16 recurrent-state requantization -> loosened tolerance vs f32 ref.
    np.testing.assert_allclose(np.asarray(out), np.asarray(ref),
                               rtol=3e-2, atol=3e-2)
    print("KERNEL_OK")
</pallas_src>

<mosaic_0001>
module attributes {stable_mosaic.version = 11 : i64} {
  func.func @lstm_fc_kernel(%arg0: i32, %arg1: memref<8x8x128xf32, #tpu.memory_space<vmem>>, %arg2: memref<1x32x128xbf16, #tpu.memory_space<vmem>>, %arg3: memref<2x32x128xbf16, #tpu.memory_space<vmem>>, %arg4: memref<1x1x128xf32, #tpu.memory_space<vmem>>, %arg5: memref<32x8xbf16, #tpu.memory_space<vmem>>, %arg6: memref<1x8xf32, #tpu.memory_space<vmem>>, %arg7: memref<8x8xf32, #tpu.memory_space<vmem>>, %arg8: memref<8x8x128xf32, #tpu.memory_space<vmem>>, %arg9: memref<8x8x32xbf16, #tpu.memory_space<vmem>>, %arg10: memref<8x32xf32, #tpu.memory_space<vmem>>, %arg11: memref<8x32xf32, #tpu.memory_space<vmem>>) attributes {dimension_semantics = [#tpu.dimension_semantics<parallel>], iteration_bounds = array<i64: 1>, scalar_prefetch = 0 : i64, scratch_operands = 4 : i64, tpu.core_type = #tpu.core_type<tc>, window_params = [{transform_indices = @transform_0, window_bounds = array<i64: 8, 8, 128>}, {pipeline_mode = #tpu.pipeline_mode<synchronous>, transform_indices = @transform_1, window_bounds = array<i64: 1, 32, 128>}, {pipeline_mode = #tpu.pipeline_mode<synchronous>, transform_indices = @transform_2, window_bounds = array<i64: 2, 32, 128>}, {pipeline_mode = #tpu.pipeline_mode<synchronous>, transform_indices = @transform_3, window_bounds = array<i64: 1, 1, 128>}, {pipeline_mode = #tpu.pipeline_mode<synchronous>, transform_indices = @transform_4, window_bounds = array<i64: 32, 8>}, {pipeline_mode = #tpu.pipeline_mode<synchronous>, transform_indices = @transform_5, window_bounds = array<i64: 1, 8>}, {transform_indices = @transform_6, window_bounds = array<i64: 8, 8>}]} {
    %c0 = arith.constant 0 : index
    %c0_0 = arith.constant 0 : index
    %c0_1 = arith.constant 0 : index
    %0 = vector.load %arg3[%c0, %c0_0, %c0_1] : memref<2x32x128xbf16, #tpu.memory_space<vmem>>, vector<1x32x128xbf16>
    %1 = vector.shape_cast %0 : vector<1x32x128xbf16> to vector<32x128xbf16>
    %c0_2 = arith.constant 0 : index
    %c0_3 = arith.constant 0 : index
    %c0_4 = arith.constant 0 : index
    %2 = vector.load %arg1[%c0_2, %c0_3, %c0_4] : memref<8x8x128xf32, #tpu.memory_space<vmem>>, vector<1x8x128xf32>
    %3 = vector.shape_cast %2 : vector<1x8x128xf32> to vector<8x128xf32>
    %4 = math.tanh %3 : vector<8x128xf32>
    %5 = vector.extract_strided_slice %4 {offsets = [0, 0], sizes = [8, 32], strides = [1, 1]} : vector<8x128xf32> to vector<8x32xf32>
    %cst = arith.constant 5.000000e-01 : f32
    %6 = vector.broadcast %cst : f32 to vector<8x32xf32>
    %7 = arith.mulf %6, %5 : vector<8x32xf32>
    %cst_5 = arith.constant 5.000000e-01 : f32
    %8 = vector.broadcast %cst_5 : f32 to vector<8x32xf32>
    %9 = arith.addf %7, %8 : vector<8x32xf32>
    %10 = vector.extract_strided_slice %4 {offsets = [0, 64], sizes = [8, 32], strides = [1, 1]} : vector<8x128xf32> to vector<8x32xf32>
    %11 = arith.mulf %9, %10 : vector<8x32xf32>
    %12 = vector.extract_strided_slice %4 {offsets = [0, 96], sizes = [8, 32], strides = [1, 1]} : vector<8x128xf32> to vector<8x32xf32>
    %cst_6 = arith.constant 5.000000e-01 : f32
    %13 = vector.broadcast %cst_6 : f32 to vector<8x32xf32>
    %14 = arith.mulf %13, %12 : vector<8x32xf32>
    %cst_7 = arith.constant 5.000000e-01 : f32
    %15 = vector.broadcast %cst_7 : f32 to vector<8x32xf32>
    %16 = arith.addf %14, %15 : vector<8x32xf32>
    %17 = math.tanh %11 : vector<8x32xf32>
    %18 = arith.mulf %16, %17 : vector<8x32xf32>
    %c0_8 = arith.constant 0 : index
    %c0_9 = arith.constant 0 : index
    %19 = vector.load %arg11[%c0_8, %c0_9] : memref<8x32xf32, #tpu.memory_space<vmem>>, vector<8x32xf32>
    tpu.vector_store %arg11[%c0_8, %c0_9], %11 {strides = array<i32>} : memref<8x32xf32, #tpu.memory_space<vmem>>, vector<8x32xf32>,
    %c0_10 = arith.constant 0 : index
    %c0_11 = arith.constant 0 : index
    %20 = vector.load %arg10[%c0_10, %c0_11] : memref<8x32xf32, #tpu.memory_space<vmem>>, vector<8x32xf32>
    tpu.vector_store %arg10[%c0_10, %c0_11], %18 {strides = array<i32>} : memref<8x32xf32, #tpu.memory_space<vmem>>, vector<8x32xf32>,
    %21 = arith.truncf %18 : vector<8x32xf32> to vector<8x32xbf16>
    %c0_12 = arith.constant 0 : index
    %c0_13 = arith.constant 0 : index
    %c0_14 = arith.constant 0 : index
    %22 = vector.load %arg9[%c0_12, %c0_13, %c0_14] : memref<8x8x32xbf16, #tpu.memory_space<vmem>>, vector<1x8x32xbf16>
    %23 = vector.shape_cast %22 : vector<1x8x32xbf16> to vector<8x32xbf16>
    %24 = vector.shape_cast %21 : vector<8x32xbf16> to vector<1x8x32xbf16>
    tpu.vector_store %arg9[%c0_12, %c0_13, %c0_14], %24 {strides = array<i32>} : memref<8x8x32xbf16, #tpu.memory_space<vmem>>, vector<1x8x32xbf16>,
    %c1_i32 = arith.constant 1 : i32
    %25 = arith.index_cast %c1_i32 : i32 to index
    %c0_15 = arith.constant 0 : index
    %c0_16 = arith.constant 0 : index
    %26 = vector.load %arg1[%25, %c0_15, %c0_16] : memref<8x8x128xf32, #tpu.memory_space<vmem>>, vector<1x8x128xf32>
    %27 = vector.shape_cast %26 : vector<1x8x128xf32> to vector<8x128xf32>
    %c0_17 = arith.constant 0 : index
    %c0_18 = arith.constant 0 : index
    %28 = vector.load %arg10[%c0_17, %c0_18] : memref<8x32xf32, #tpu.memory_space<vmem>>, vector<8x32xf32>
    %29 = arith.truncf %28 : vector<8x32xf32> to vector<8x32xbf16>
    %cst_19 = arith.constant dense<0.000000e+00> : vector<8x128xf32>
    %30 = tpu.matmul %29, %1, %cst_19 {dimension_numbers = #tpu.dot_dimension_numbers<[1], [0], [0], [1], [0, 0, 1, 1], [], []>} : vector<8x32xbf16>, vector<32x128xbf16>, vector<8x128xf32> -> vector<8x128xf32>
    %31 = arith.addf %27, %30 : vector<8x128xf32>
    %32 = math.tanh %31 : vector<8x128xf32>
    %33 = vector.extract_strided_slice %32 {offsets = [0, 32], sizes = [8, 32], strides = [1, 1]} : vector<8x128xf32> to vector<8x32xf32>
    %cst_20 = arith.constant 5.000000e-01 : f32
    %34 = vector.broadcast %cst_20 : f32 to vector<8x32xf32>
    %35 = arith.mulf %34, %33 : vector<8x32xf32>
    %cst_21 = arith.constant 5.000000e-01 : f32
    %36 = vector.broadcast %cst_21 : f32 to vector<8x32xf32>
    %37 = arith.addf %35, %36 : vector<8x32xf32>
    %c0_22 = arith.constant 0 : index
    %c0_23 = arith.constant 0 : index
    %38 = vector.load %arg11[%c0_22, %c0_23] : memref<8x32xf32, #tpu.memory_space<vmem>>, vector<8x32xf32>
    %39 = arith.mulf %37, %38 : vector<8x32xf32>
    %40 = vector.extract_strided_slice %32 {offsets = [0, 0], sizes = [8, 32], strides = [1, 1]} : vector<8x128xf32> to vector<8x32xf32>
    %cst_24 = arith.constant 5.000000e-01 : f32
    %41 = vector.broadcast %cst_24 : f32 to vector<8x32xf32>
    %42 = arith.mulf %41, %40 : vector<8x32xf32>
    %cst_25 = arith.constant 5.000000e-01 : f32
    %43 = vector.broadcast %cst_25 : f32 to vector<8x32xf32>
    %44 = arith.addf %42, %43 : vector<8x32xf32>
    %45 = vector.extract_strided_slice %32 {offsets = [0, 64], sizes = [8, 32], strides = [1, 1]} : vector<8x128xf32> to vector<8x32xf32>
    %46 = arith.mulf %44, %45 : vector<8x32xf32>
    %47 = arith.addf %39, %46 : vector<8x32xf32>
    %48 = vector.extract_strided_slice %32 {offsets = [0, 96], sizes = [8, 32], strides = [1, 1]} : vector<8x128xf32> to vector<8x32xf32>
    %cst_26 = arith.constant 5.000000e-01 : f32
    %49 = vector.broadcast %cst_26 : f32 to vector<8x32xf32>
    %50 = arith.mulf %49, %48 : vector<8x32xf32>
    %cst_27 = arith.constant 5.000000e-01 : f32
    %51 = vector.broadcast %cst_27 : f32 to vector<8x32xf32>
    %52 = arith.addf %50, %51 : vector<8x32xf32>
    %53 = math.tanh %47 : vector<8x32xf32>
    %54 = arith.mulf %52, %53 : vector<8x32xf32>
    %c0_28 = arith.constant 0 : index
    %c0_29 = arith.constant 0 : index
    %55 = vector.load %arg11[%c0_28, %c0_29] : memref<8x32xf32, #tpu.memory_space<vmem>>, vector<8x32xf32>
    tpu.vector_store %arg11[%c0_28, %c0_29], %47 {strides = array<i32>} : memref<8x32xf32, #tpu.memory_space<vmem>>, vector<8x32xf32>,
    %c0_30 = arith.constant 0 : index
    %c0_31 = arith.constant 0 : index
    %56 = vector.load %arg10[%c0_30, %c0_31] : memref<8x32xf32, #tpu.memory_space<vmem>>, vector<8x32xf32>
    tpu.vector_store %arg10[%c0_30, %c0_31], %54 {strides = array<i32>} : memref<8x32xf32, #tpu.memory_space<vmem>>, vector<8x32xf32>,
    %57 = arith.truncf %54 : vector<8x32xf32> to vector<8x32xbf16>
    %58 = arith.index_cast %c1_i32 : i32 to index
    %c0_32 = arith.constant 0 : index
    %c0_33 = arith.constant 0 : index
    %59 = vector.load %arg9[%58, %c0_32, %c0_33] : memref<8x8x32xbf16, #tpu.memory_space<vmem>>, vector<1x8x32xbf16>
    %60 = vector.shape_cast %59 : vector<1x8x32xbf16> to vector<8x32xbf16>
    %61 = vector.shape_cast %57 : vector<8x32xbf16> to vector<1x8x32xbf16>
    tpu.vector_store %arg9[%58, %c0_32, %c0_33], %61 {strides = array<i32>} : memref<8x8x32xbf16, #tpu.memory_space<vmem>>, vector<1x8x32xbf16>,
    %c2_i32 = arith.constant 2 : i32
    %62 = arith.index_cast %c2_i32 : i32 to index
    %c0_34 = arith.constant 0 : index
    %c0_35 = arith.constant 0 : index
    %63 = vector.load %arg1[%62, %c0_34, %c0_35] : memref<8x8x128xf32, #tpu.memory_space<vmem>>, vector<1x8x128xf32>
    %64 = vector.shape_cast %63 : vector<1x8x128xf32> to vector<8x128xf32>
    %c0_36 = arith.constant 0 : index
    %c0_37 = arith.constant 0 : index
    %65 = vector.load %arg10[%c0_36, %c0_37] : memref<8x32xf32, #tpu.memory_space<vmem>>, vector<8x32xf32>
    %66 = arith.truncf %65 : vector<8x32xf32> to vector<8x32xbf16>
    %cst_38 = arith.constant dense<0.000000e+00> : vector<8x128xf32>
    %67 = tpu.matmul %66, %1, %cst_38 {dimension_numbers = #tpu.dot_dimension_numbers<[1], [0], [0], [1], [0, 0, 1, 1], [], []>} : vector<8x32xbf16>, vector<32x128xbf16>, vector<8x128xf32> -> vector<8x128xf32>
    %68 = arith.addf %64, %67 : vector<8x128xf32>
    %69 = math.tanh %68 : vector<8x128xf32>
    %70 = vector.extract_strided_slice %69 {offsets = [0, 32], sizes = [8, 32], strides = [1, 1]} : vector<8x128xf32> to vector<8x32xf32>
    %cst_39 = arith.constant 5.000000e-01 : f32
    %71 = vector.broadcast %cst_39 : f32 to vector<8x32xf32>
    %72 = arith.mulf %71, %70 : vector<8x32xf32>
    %cst_40 = arith.constant 5.000000e-01 : f32
    %73 = vector.broadcast %cst_40 : f32 to vector<8x32xf32>
    %74 = arith.addf %72, %73 : vector<8x32xf32>
    %c0_41 = arith.constant 0 : index
    %c0_42 = arith.constant 0 : index
    %75 = vector.load %arg11[%c0_41, %c0_42] : memref<8x32xf32, #tpu.memory_space<vmem>>, vector<8x32xf32>
    %76 = arith.mulf %74, %75 : vector<8x32xf32>
    %77 = vector.extract_strided_slice %69 {offsets = [0, 0], sizes = [8, 32], strides = [1, 1]} : vector<8x128xf32> to vector<8x32xf32>
    %cst_43 = arith.constant 5.000000e-01 : f32
    %78 = vector.broadcast %cst_43 : f32 to vector<8x32xf32>
    %79 = arith.mulf %78, %77 : vector<8x32xf32>
    %cst_44 = arith.constant 5.000000e-01 : f32
    %80 = vector.broadcast %cst_44 : f32 to vector<8x32xf32>
    %81 = arith.addf %79, %80 : vector<8x32xf32>
    %82 = vector.extract_strided_slice %69 {offsets = [0, 64], sizes = [8, 32], strides = [1, 1]} : vector<8x128xf32> to vector<8x32xf32>
    %83 = arith.mulf %81, %82 : vector<8x32xf32>
    %84 = arith.addf %76, %83 : vector<8x32xf32>
    %85 = vector.extract_strided_slice %69 {offsets = [0, 96], sizes = [8, 32], strides = [1, 1]} : vector<8x128xf32> to vector<8x32xf32>
    %cst_45 = arith.constant 5.000000e-01 : f32
    %86 = vector.broadcast %cst_45 : f32 to vector<8x32xf32>
    %87 = arith.mulf %86, %85 : vector<8x32xf32>
    %cst_46 = arith.constant 5.000000e-01 : f32
    %88 = vector.broadcast %cst_46 : f32 to vector<8x32xf32>
    %89 = arith.addf %87, %88 : vector<8x32xf32>
    %90 = math.tanh %84 : vector<8x32xf32>
    %91 = arith.mulf %89, %90 : vector<8x32xf32>
    %c0_47 = arith.constant 0 : index
    %c0_48 = arith.constant 0 : index
    %92 = vector.load %arg11[%c0_47, %c0_48] : memref<8x32xf32, #tpu.memory_space<vmem>>, vector<8x32xf32>
    tpu.vector_store %arg11[%c0_47, %c0_48], %84 {strides = array<i32>} : memref<8x32xf32, #tpu.memory_space<vmem>>, vector<8x32xf32>,
    %c0_49 = arith.constant 0 : index
    %c0_50 = arith.constant 0 : index
    %93 = vector.load %arg10[%c0_49, %c0_50] : memref<8x32xf32, #tpu.memory_space<vmem>>, vector<8x32xf32>
    tpu.vector_store %arg10[%c0_49, %c0_50], %91 {strides = array<i32>} : memref<8x32xf32, #tpu.memory_space<vmem>>, vector<8x32xf32>,
    %94 = arith.truncf %91 : vector<8x32xf32> to vector<8x32xbf16>
    %95 = arith.index_cast %c2_i32 : i32 to index
    %c0_51 = arith.constant 0 : index
    %c0_52 = arith.constant 0 : index
    %96 = vector.load %arg9[%95, %c0_51, %c0_52] : memref<8x8x32xbf16, #tpu.memory_space<vmem>>, vector<1x8x32xbf16>
    %97 = vector.shape_cast %96 : vector<1x8x32xbf16> to vector<8x32xbf16>
    %98 = vector.shape_cast %94 : vector<8x32xbf16> to vector<1x8x32xbf16>
    tpu.vector_store %arg9[%95, %c0_51, %c0_52], %98 {strides = array<i32>} : memref<8x8x32xbf16, #tpu.memory_space<vmem>>, vector<1x8x32xbf16>,
    %c3_i32 = arith.constant 3 : i32
    %99 = arith.index_cast %c3_i32 : i32 to index
    %c0_53 = arith.constant 0 : index
    %c0_54 = arith.constant 0 : index
    %100 = vector.load %arg1[%99, %c0_53, %c0_54] : memref<8x8x128xf32, #tpu.memory_space<vmem>>, vector<1x8x128xf32>
    %101 = vector.shape_cast %100 : vector<1x8x128xf32> to vector<8x128xf32>
    %c0_55 = arith.constant 0 : index
    %c0_56 = arith.constant 0 : index
    %102 = vector.load %arg10[%c0_55, %c0_56] : memref<8x32xf32, #tpu.memory_space<vmem>>, vector<8x32xf32>
    %103 = arith.truncf %102 : vector<8x32xf32> to vector<8x32xbf16>
    %cst_57 = arith.constant dense<0.000000e+00> : vector<8x128xf32>
    %104 = tpu.matmul %103, %1, %cst_57 {dimension_numbers = #tpu.dot_dimension_numbers<[1], [0], [0], [1], [0, 0, 1, 1], [], []>} : vector<8x32xbf16>, vector<32x128xbf16>, vector<8x128xf32> -> vector<8x128xf32>
    %105 = arith.addf %101, %104 : vector<8x128xf32>
    %106 = math.tanh %105 : vector<8x128xf32>
    %107 = vector.extract_strided_slice %106 {offsets = [0, 32], sizes = [8, 32], strides = [1, 1]} : vector<8x128xf32> to vector<8x32xf32>
    %cst_58 = arith.constant 5.000000e-01 : f32
    %108 = vector.broadcast %cst_58 : f32 to vector<8x32xf32>
    %109 = arith.mulf %108, %107 : vector<8x32xf32>
    %cst_59 = arith.constant 5.000000e-01 : f32
    %110 = vector.broadcast %cst_59 : f32 to vector<8x32xf32>
    %111 = arith.addf %109, %110 : vector<8x32xf32>
    %c0_60 = arith.constant 0 : index
    %c0_61 = arith.constant 0 : index
    %112 = vector.load %arg11[%c0_60, %c0_61] : memref<8x32xf32, #tpu.memory_space<vmem>>, vector<8x32xf32>
    %113 = arith.mulf %111, %112 : vector<8x32xf32>
    %114 = vector.extract_strided_slice %106 {offsets = [0, 0], sizes = [8, 32], strides = [1, 1]} : vector<8x128xf32> to vector<8x32xf32>
    %cst_62 = arith.constant 5.000000e-01 : f32
    %115 = vector.broadcast %cst_62 : f32 to vector<8x32xf32>
    %116 = arith.mulf %115, %114 : vector<8x32xf32>
    %cst_63 = arith.constant 5.000000e-01 : f32
    %117 = vector.broadcast %cst_63 : f32 to vector<8x32xf32>
    %118 = arith.addf %116, %117 : vector<8x32xf32>
    %119 = vector.extract_strided_slice %106 {offsets = [0, 64], sizes = [8, 32], strides = [1, 1]} : vector<8x128xf32> to vector<8x32xf32>
    %120 = arith.mulf %118, %119 : vector<8x32xf32>
    %121 = arith.addf %113, %120 : vector<8x32xf32>
    %122 = vector.extract_strided_slice %106 {offsets = [0, 96], sizes = [8, 32], strides = [1, 1]} : vector<8x128xf32> to vector<8x32xf32>
    %cst_64 = arith.constant 5.000000e-01 : f32
    %123 = vector.broadcast %cst_64 : f32 to vector<8x32xf32>
    %124 = arith.mulf %123, %122 : vector<8x32xf32>
    %cst_65 = arith.constant 5.000000e-01 : f32
    %125 = vector.broadcast %cst_65 : f32 to vector<8x32xf32>
    %126 = arith.addf %124, %125 : vector<8x32xf32>
    %127 = math.tanh %121 : vector<8x32xf32>
    %128 = arith.mulf %126, %127 : vector<8x32xf32>
    %c0_66 = arith.constant 0 : index
    %c0_67 = arith.constant 0 : index
    %129 = vector.load %arg11[%c0_66, %c0_67] : memref<8x32xf32, #tpu.memory_space<vmem>>, vector<8x32xf32>
    tpu.vector_store %arg11[%c0_66, %c0_67], %121 {strides = array<i32>} : memref<8x32xf32, #tpu.memory_space<vmem>>, vector<8x32xf32>,
    %c0_68 = arith.constant 0 : index
    %c0_69 = arith.constant 0 : index
    %130 = vector.load %arg10[%c0_68, %c0_69] : memref<8x32xf32, #tpu.memory_space<vmem>>, vector<8x32xf32>
    tpu.vector_store %arg10[%c0_68, %c0_69], %128 {strides = array<i32>} : memref<8x32xf32, #tpu.memory_space<vmem>>, vector<8x32xf32>,
    %131 = arith.truncf %128 : vector<8x32xf32> to vector<8x32xbf16>
    %132 = arith.index_cast %c3_i32 : i32 to index
    %c0_70 = arith.constant 0 : index
    %c0_71 = arith.constant 0 : index
    %133 = vector.load %arg9[%132, %c0_70, %c0_71] : memref<8x8x32xbf16, #tpu.memory_space<vmem>>, vector<1x8x32xbf16>
    %134 = vector.shape_cast %133 : vector<1x8x32xbf16> to vector<8x32xbf16>
    %135 = vector.shape_cast %131 : vector<8x32xbf16> to vector<1x8x32xbf16>
    tpu.vector_store %arg9[%132, %c0_70, %c0_71], %135 {strides = array<i32>} : memref<8x8x32xbf16, #tpu.memory_space<vmem>>, vector<1x8x32xbf16>,
    %c4_i32 = arith.constant 4 : i32
    %136 = arith.index_cast %c4_i32 : i32 to index
    %c0_72 = arith.constant 0 : index
    %c0_73 = arith.constant 0 : index
    %137 = vector.load %arg1[%136, %c0_72, %c0_73] : memref<8x8x128xf32, #tpu.memory_space<vmem>>, vector<1x8x128xf32>
    %138 = vector.shape_cast %137 : vector<1x8x128xf32> to vector<8x128xf32>
    %c0_74 = arith.constant 0 : index
    %c0_75 = arith.constant 0 : index
    %139 = vector.load %arg10[%c0_74, %c0_75] : memref<8x32xf32, #tpu.memory_space<vmem>>, vector<8x32xf32>
    %140 = arith.truncf %139 : vector<8x32xf32> to vector<8x32xbf16>
    %cst_76 = arith.constant dense<0.000000e+00> : vector<8x128xf32>
    %141 = tpu.matmul %140, %1, %cst_76 {dimension_numbers = #tpu.dot_dimension_numbers<[1], [0], [0], [1], [0, 0, 1, 1], [], []>} : vector<8x32xbf16>, vector<32x128xbf16>, vector<8x128xf32> -> vector<8x128xf32>
    %142 = arith.addf %138, %141 : vector<8x128xf32>
    %143 = math.tanh %142 : vector<8x128xf32>
    %144 = vector.extract_strided_slice %143 {offsets = [0, 32], sizes = [8, 32], strides = [1, 1]} : vector<8x128xf32> to vector<8x32xf32>
    %cst_77 = arith.constant 5.000000e-01 : f32
    %145 = vector.broadcast %cst_77 : f32 to vector<8x32xf32>
    %146 = arith.mulf %145, %144 : vector<8x32xf32>
    %cst_78 = arith.constant 5.000000e-01 : f32
    %147 = vector.broadcast %cst_78 : f32 to vector<8x32xf32>
    %148 = arith.addf %146, %147 : vector<8x32xf32>
    %c0_79 = arith.constant 0 : index
    %c0_80 = arith.constant 0 : index
    %149 = vector.load %arg11[%c0_79, %c0_80] : memref<8x32xf32, #tpu.memory_space<vmem>>, vector<8x32xf32>
    %150 = arith.mulf %148, %149 : vector<8x32xf32>
    %151 = vector.extract_strided_slice %143 {offsets = [0, 0], sizes = [8, 32], strides = [1, 1]} : vector<8x128xf32> to vector<8x32xf32>
    %cst_81 = arith.constant 5.000000e-01 : f32
    %152 = vector.broadcast %cst_81 : f32 to vector<8x32xf32>
    %153 = arith.mulf %152, %151 : vector<8x32xf32>
    %cst_82 = arith.constant 5.000000e-01 : f32
    %154 = vector.broadcast %cst_82 : f32 to vector<8x32xf32>
    %155 = arith.addf %153, %154 : vector<8x32xf32>
    %156 = vector.extract_strided_slice %143 {offsets = [0, 64], sizes = [8, 32], strides = [1, 1]} : vector<8x128xf32> to vector<8x32xf32>
    %157 = arith.mulf %155, %156 : vector<8x32xf32>
    %158 = arith.addf %150, %157 : vector<8x32xf32>
    %159 = vector.extract_strided_slice %143 {offsets = [0, 96], sizes = [8, 32], strides = [1, 1]} : vector<8x128xf32> to vector<8x32xf32>
    %cst_83 = arith.constant 5.000000e-01 : f32
    %160 = vector.broadcast %cst_83 : f32 to vector<8x32xf32>
    %161 = arith.mulf %160, %159 : vector<8x32xf32>
    %cst_84 = arith.constant 5.000000e-01 : f32
    %162 = vector.broadcast %cst_84 : f32 to vector<8x32xf32>
    %163 = arith.addf %161, %162 : vector<8x32xf32>
    %164 = math.tanh %158 : vector<8x32xf32>
    %165 = arith.mulf %163, %164 : vector<8x32xf32>
    %c0_85 = arith.constant 0 : index
    %c0_86 = arith.constant 0 : index
    %166 = vector.load %arg11[%c0_85, %c0_86] : memref<8x32xf32, #tpu.memory_space<vmem>>, vector<8x32xf32>
    tpu.vector_store %arg11[%c0_85, %c0_86], %158 {strides = array<i32>} : memref<8x32xf32, #tpu.memory_space<vmem>>, vector<8x32xf32>,
    %c0_87 = arith.constant 0 : index
    %c0_88 = arith.constant 0 : index
    %167 = vector.load %arg10[%c0_87, %c0_88] : memref<8x32xf32, #tpu.memory_space<vmem>>, vector<8x32xf32>
    tpu.vector_store %arg10[%c0_87, %c0_88], %165 {strides = array<i32>} : memref<8x32xf32, #tpu.memory_space<vmem>>, vector<8x32xf32>,
    %168 = arith.truncf %165 : vector<8x32xf32> to vector<8x32xbf16>
    %169 = arith.index_cast %c4_i32 : i32 to index
    %c0_89 = arith.constant 0 : index
    %c0_90 = arith.constant 0 : index
    %170 = vector.load %arg9[%169, %c0_89, %c0_90] : memref<8x8x32xbf16, #tpu.memory_space<vmem>>, vector<1x8x32xbf16>
    %171 = vector.shape_cast %170 : vector<1x8x32xbf16> to vector<8x32xbf16>
    %172 = vector.shape_cast %168 : vector<8x32xbf16> to vector<1x8x32xbf16>
    tpu.vector_store %arg9[%169, %c0_89, %c0_90], %172 {strides = array<i32>} : memref<8x8x32xbf16, #tpu.memory_space<vmem>>, vector<1x8x32xbf16>,
    %c5_i32 = arith.constant 5 : i32
    %173 = arith.index_cast %c5_i32 : i32 to index
    %c0_91 = arith.constant 0 : index
    %c0_92 = arith.constant 0 : index
    %174 = vector.load %arg1[%173, %c0_91, %c0_92] : memref<8x8x128xf32, #tpu.memory_space<vmem>>, vector<1x8x128xf32>
    %175 = vector.shape_cast %174 : vector<1x8x128xf32> to vector<8x128xf32>
    %c0_93 = arith.constant 0 : index
    %c0_94 = arith.constant 0 : index
    %176 = vector.load %arg10[%c0_93, %c0_94] : memref<8x32xf32, #tpu.memory_space<vmem>>, vector<8x32xf32>
    %177 = arith.truncf %176 : vector<8x32xf32> to vector<8x32xbf16>
    %cst_95 = arith.constant dense<0.000000e+00> : vector<8x128xf32>
    %178 = tpu.matmul %177, %1, %cst_95 {dimension_numbers = #tpu.dot_dimension_numbers<[1], [0], [0], [1], [0, 0, 1, 1], [], []>} : vector<8x32xbf16>, vector<32x128xbf16>, vector<8x128xf32> -> vector<8x128xf32>
    %179 = arith.addf %175, %178 : vector<8x128xf32>
    %180 = math.tanh %179 : vector<8x128xf32>
    %181 = vector.extract_strided_slice %180 {offsets = [0, 32], sizes = [8, 32], strides = [1, 1]} : vector<8x128xf32> to vector<8x32xf32>
    %cst_96 = arith.constant 5.000000e-01 : f32
    %182 = vector.broadcast %cst_96 : f32 to vector<8x32xf32>
    %183 = arith.mulf %182, %181 : vector<8x32xf32>
    %cst_97 = arith.constant 5.000000e-01 : f32
    %184 = vector.broadcast %cst_97 : f32 to vector<8x32xf32>
    %185 = arith.addf %183, %184 : vector<8x32xf32>
    %c0_98 = arith.constant 0 : index
    %c0_99 = arith.constant 0 : index
    %186 = vector.load %arg11[%c0_98, %c0_99] : memref<8x32xf32, #tpu.memory_space<vmem>>, vector<8x32xf32>
    %187 = arith.mulf %185, %186 : vector<8x32xf32>
    %188 = vector.extract_strided_slice %180 {offsets = [0, 0], sizes = [8, 32], strides = [1, 1]} : vector<8x128xf32> to vector<8x32xf32>
    %cst_100 = arith.constant 5.000000e-01 : f32
    %189 = vector.broadcast %cst_100 : f32 to vector<8x32xf32>
    %190 = arith.mulf %189, %188 : vector<8x32xf32>
    %cst_101 = arith.constant 5.000000e-01 : f32
    %191 = vector.broadcast %cst_101 : f32 to vector<8x32xf32>
    %192 = arith.addf %190, %191 : vector<8x32xf32>
    %193 = vector.extract_strided_slice %180 {offsets = [0, 64], sizes = [8, 32], strides = [1, 1]} : vector<8x128xf32> to vector<8x32xf32>
    %194 = arith.mulf %192, %193 : vector<8x32xf32>
    %195 = arith.addf %187, %194 : vector<8x32xf32>
    %196 = vector.extract_strided_slice %180 {offsets = [0, 96], sizes = [8, 32], strides = [1, 1]} : vector<8x128xf32> to vector<8x32xf32>
    %cst_102 = arith.constant 5.000000e-01 : f32
    %197 = vector.broadcast %cst_102 : f32 to vector<8x32xf32>
    %198 = arith.mulf %197, %196 : vector<8x32xf32>
    %cst_103 = arith.constant 5.000000e-01 : f32
    %199 = vector.broadcast %cst_103 : f32 to vector<8x32xf32>
    %200 = arith.addf %198, %199 : vector<8x32xf32>
    %201 = math.tanh %195 : vector<8x32xf32>
    %202 = arith.mulf %200, %201 : vector<8x32xf32>
    %c0_104 = arith.constant 0 : index
    %c0_105 = arith.constant 0 : index
    %203 = vector.load %arg11[%c0_104, %c0_105] : memref<8x32xf32, #tpu.memory_space<vmem>>, vector<8x32xf32>
    tpu.vector_store %arg11[%c0_104, %c0_105], %195 {strides = array<i32>} : memref<8x32xf32, #tpu.memory_space<vmem>>, vector<8x32xf32>,
    %c0_106 = arith.constant 0 : index
    %c0_107 = arith.constant 0 : index
    %204 = vector.load %arg10[%c0_106, %c0_107] : memref<8x32xf32, #tpu.memory_space<vmem>>, vector<8x32xf32>
    tpu.vector_store %arg10[%c0_106, %c0_107], %202 {strides = array<i32>} : memref<8x32xf32, #tpu.memory_space<vmem>>, vector<8x32xf32>,
    %205 = arith.truncf %202 : vector<8x32xf32> to vector<8x32xbf16>
    %206 = arith.index_cast %c5_i32 : i32 to index
    %c0_108 = arith.constant 0 : index
    %c0_109 = arith.constant 0 : index
    %207 = vector.load %arg9[%206, %c0_108, %c0_109] : memref<8x8x32xbf16, #tpu.memory_space<vmem>>, vector<1x8x32xbf16>
    %208 = vector.shape_cast %207 : vector<1x8x32xbf16> to vector<8x32xbf16>
    %209 = vector.shape_cast %205 : vector<8x32xbf16> to vector<1x8x32xbf16>
    tpu.vector_store %arg9[%206, %c0_108, %c0_109], %209 {strides = array<i32>} : memref<8x8x32xbf16, #tpu.memory_space<vmem>>, vector<1x8x32xbf16>,
    %c6_i32 = arith.constant 6 : i32
    %210 = arith.index_cast %c6_i32 : i32 to index
    %c0_110 = arith.constant 0 : index
    %c0_111 = arith.constant 0 : index
    %211 = vector.load %arg1[%210, %c0_110, %c0_111] : memref<8x8x128xf32, #tpu.memory_space<vmem>>, vector<1x8x128xf32>
    %212 = vector.shape_cast %211 : vector<1x8x128xf32> to vector<8x128xf32>
    %c0_112 = arith.constant 0 : index
    %c0_113 = arith.constant 0 : index
    %213 = vector.load %arg10[%c0_112, %c0_113] : memref<8x32xf32, #tpu.memory_space<vmem>>, vector<8x32xf32>
    %214 = arith.truncf %213 : vector<8x32xf32> to vector<8x32xbf16>
    %cst_114 = arith.constant dense<0.000000e+00> : vector<8x128xf32>
    %215 = tpu.matmul %214, %1, %cst_114 {dimension_numbers = #tpu.dot_dimension_numbers<[1], [0], [0], [1], [0, 0, 1, 1], [], []>} : vector<8x32xbf16>, vector<32x128xbf16>, vector<8x128xf32> -> vector<8x128xf32>
    %216 = arith.addf %212, %215 : vector<8x128xf32>
    %217 = math.tanh %216 : vector<8x128xf32>
    %218 = vector.extract_strided_slice %217 {offsets = [0, 32], sizes = [8, 32], strides = [1, 1]} : vector<8x128xf32> to vector<8x32xf32>
    %cst_115 = arith.constant 5.000000e-01 : f32
    %219 = vector.broadcast %cst_115 : f32 to vector<8x32xf32>
    %220 = arith.mulf %219, %218 : vector<8x32xf32>
    %cst_116 = arith.constant 5.000000e-01 : f32
    %221 = vector.broadcast %cst_116 : f32 to vector<8x32xf32>
    %222 = arith.addf %220, %221 : vector<8x32xf32>
    %c0_117 = arith.constant 0 : index
    %c0_118 = arith.constant 0 : index
    %223 = vector.load %arg11[%c0_117, %c0_118] : memref<8x32xf32, #tpu.memory_space<vmem>>, vector<8x32xf32>
    %224 = arith.mulf %222, %223 : vector<8x32xf32>
    %225 = vector.extract_strided_slice %217 {offsets = [0, 0], sizes = [8, 32], strides = [1, 1]} : vector<8x128xf32> to vector<8x32xf32>
    %cst_119 = arith.constant 5.000000e-01 : f32
    %226 = vector.broadcast %cst_119 : f32 to vector<8x32xf32>
    %227 = arith.mulf %226, %225 : vector<8x32xf32>
    %cst_120 = arith.constant 5.000000e-01 : f32
    %228 = vector.broadcast %cst_120 : f32 to vector<8x32xf32>
    %229 = arith.addf %227, %228 : vector<8x32xf32>
    %230 = vector.extract_strided_slice %217 {offsets = [0, 64], sizes = [8, 32], strides = [1, 1]} : vector<8x128xf32> to vector<8x32xf32>
    %231 = arith.mulf %229, %230 : vector<8x32xf32>
    %232 = arith.addf %224, %231 : vector<8x32xf32>
    %233 = vector.extract_strided_slice %217 {offsets = [0, 96], sizes = [8, 32], strides = [1, 1]} : vector<8x128xf32> to vector<8x32xf32>
    %cst_121 = arith.constant 5.000000e-01 : f32
    %234 = vector.broadcast %cst_121 : f32 to vector<8x32xf32>
    %235 = arith.mulf %234, %233 : vector<8x32xf32>
    %cst_122 = arith.constant 5.000000e-01 : f32
    %236 = vector.broadcast %cst_122 : f32 to vector<8x32xf32>
    %237 = arith.addf %235, %236 : vector<8x32xf32>
    %238 = math.tanh %232 : vector<8x32xf32>
    %239 = arith.mulf %237, %238 : vector<8x32xf32>
    %c0_123 = arith.constant 0 : index
    %c0_124 = arith.constant 0 : index
    %240 = vector.load %arg11[%c0_123, %c0_124] : memref<8x32xf32, #tpu.memory_space<vmem>>, vector<8x32xf32>
    tpu.vector_store %arg11[%c0_123, %c0_124], %232 {strides = array<i32>} : memref<8x32xf32, #tpu.memory_space<vmem>>, vector<8x32xf32>,
    %c0_125 = arith.constant 0 : index
    %c0_126 = arith.constant 0 : index
    %241 = vector.load %arg10[%c0_125, %c0_126] : memref<8x32xf32, #tpu.memory_space<vmem>>, vector<8x32xf32>
    tpu.vector_store %arg10[%c0_125, %c0_126], %239 {strides = array<i32>} : memref<8x32xf32, #tpu.memory_space<vmem>>, vector<8x32xf32>,
    %242 = arith.truncf %239 : vector<8x32xf32> to vector<8x32xbf16>
    %243 = arith.index_cast %c6_i32 : i32 to index
    %c0_127 = arith.constant 0 : index
    %c0_128 = arith.constant 0 : index
    %244 = vector.load %arg9[%243, %c0_127, %c0_128] : memref<8x8x32xbf16, #tpu.memory_space<vmem>>, vector<1x8x32xbf16>
    %245 = vector.shape_cast %244 : vector<1x8x32xbf16> to vector<8x32xbf16>
    %246 = vector.shape_cast %242 : vector<8x32xbf16> to vector<1x8x32xbf16>
    tpu.vector_store %arg9[%243, %c0_127, %c0_128], %246 {strides = array<i32>} : memref<8x8x32xbf16, #tpu.memory_space<vmem>>, vector<1x8x32xbf16>,
    %c7_i32 = arith.constant 7 : i32
    %247 = arith.index_cast %c7_i32 : i32 to index
    %c0_129 = arith.constant 0 : index
    %c0_130 = arith.constant 0 : index
    %248 = vector.load %arg1[%247, %c0_129, %c0_130] : memref<8x8x128xf32, #tpu.memory_space<vmem>>, vector<1x8x128xf32>
    %249 = vector.shape_cast %248 : vector<1x8x128xf32> to vector<8x128xf32>
    %c0_131 = arith.constant 0 : index
    %c0_132 = arith.constant 0 : index
    %250 = vector.load %arg10[%c0_131, %c0_132] : memref<8x32xf32, #tpu.memory_space<vmem>>, vector<8x32xf32>
    %251 = arith.truncf %250 : vector<8x32xf32> to vector<8x32xbf16>
    %cst_133 = arith.constant dense<0.000000e+00> : vector<8x128xf32>
    %252 = tpu.matmul %251, %1, %cst_133 {dimension_numbers = #tpu.dot_dimension_numbers<[1], [0], [0], [1], [0, 0, 1, 1], [], []>} : vector<8x32xbf16>, vector<32x128xbf16>, vector<8x128xf32> -> vector<8x128xf32>
    %253 = arith.addf %249, %252 : vector<8x128xf32>
    %254 = math.tanh %253 : vector<8x128xf32>
    %255 = vector.extract_strided_slice %254 {offsets = [0, 32], sizes = [8, 32], strides = [1, 1]} : vector<8x128xf32> to vector<8x32xf32>
    %cst_134 = arith.constant 5.000000e-01 : f32
    %256 = vector.broadcast %cst_134 : f32 to vector<8x32xf32>
    %257 = arith.mulf %256, %255 : vector<8x32xf32>
    %cst_135 = arith.constant 5.000000e-01 : f32
    %258 = vector.broadcast %cst_135 : f32 to vector<8x32xf32>
    %259 = arith.addf %257, %258 : vector<8x32xf32>
    %c0_136 = arith.constant 0 : index
    %c0_137 = arith.constant 0 : index
    %260 = vector.load %arg11[%c0_136, %c0_137] : memref<8x32xf32, #tpu.memory_space<vmem>>, vector<8x32xf32>
    %261 = arith.mulf %259, %260 : vector<8x32xf32>
    %262 = vector.extract_strided_slice %254 {offsets = [0, 0], sizes = [8, 32], strides = [1, 1]} : vector<8x128xf32> to vector<8x32xf32>
    %cst_138 = arith.constant 5.000000e-01 : f32
    %263 = vector.broadcast %cst_138 : f32 to vector<8x32xf32>
    %264 = arith.mulf %263, %262 : vector<8x32xf32>
    %cst_139 = arith.constant 5.000000e-01 : f32
    %265 = vector.broadcast %cst_139 : f32 to vector<8x32xf32>
    %266 = arith.addf %264, %265 : vector<8x32xf32>
    %267 = vector.extract_strided_slice %254 {offsets = [0, 64], sizes = [8, 32], strides = [1, 1]} : vector<8x128xf32> to vector<8x32xf32>
    %268 = arith.mulf %266, %267 : vector<8x32xf32>
    %269 = arith.addf %261, %268 : vector<8x32xf32>
    %270 = vector.extract_strided_slice %254 {offsets = [0, 96], sizes = [8, 32], strides = [1, 1]} : vector<8x128xf32> to vector<8x32xf32>
    %cst_140 = arith.constant 5.000000e-01 : f32
    %271 = vector.broadcast %cst_140 : f32 to vector<8x32xf32>
    %272 = arith.mulf %271, %270 : vector<8x32xf32>
    %cst_141 = arith.constant 5.000000e-01 : f32
    %273 = vector.broadcast %cst_141 : f32 to vector<8x32xf32>
    %274 = arith.addf %272, %273 : vector<8x32xf32>
    %275 = math.tanh %269 : vector<8x32xf32>
    %276 = arith.mulf %274, %275 : vector<8x32xf32>
    %c0_142 = arith.constant 0 : index
    %c0_143 = arith.constant 0 : index
    %277 = vector.load %arg11[%c0_142, %c0_143] : memref<8x32xf32, #tpu.memory_space<vmem>>, vector<8x32xf32>
    tpu.vector_store %arg11[%c0_142, %c0_143], %269 {strides = array<i32>} : memref<8x32xf32, #tpu.memory_space<vmem>>, vector<8x32xf32>,
    %c0_144 = arith.constant 0 : index
    %c0_145 = arith.constant 0 : index
    %278 = vector.load %arg10[%c0_144, %c0_145] : memref<8x32xf32, #tpu.memory_space<vmem>>, vector<8x32xf32>
    tpu.vector_store %arg10[%c0_144, %c0_145], %276 {strides = array<i32>} : memref<8x32xf32, #tpu.memory_space<vmem>>, vector<8x32xf32>,
    %279 = arith.truncf %276 : vector<8x32xf32> to vector<8x32xbf16>
    %280 = arith.index_cast %c7_i32 : i32 to index
    %c0_146 = arith.constant 0 : index
    %c0_147 = arith.constant 0 : index
    %281 = vector.load %arg9[%280, %c0_146, %c0_147] : memref<8x8x32xbf16, #tpu.memory_space<vmem>>, vector<1x8x32xbf16>
    %282 = vector.shape_cast %281 : vector<1x8x32xbf16> to vector<8x32xbf16>
    %283 = vector.shape_cast %279 : vector<8x32xbf16> to vector<1x8x32xbf16>
    tpu.vector_store %arg9[%280, %c0_146, %c0_147], %283 {strides = array<i32>} : memref<8x8x32xbf16, #tpu.memory_space<vmem>>, vector<1x8x32xbf16>,
    %c7_i32_148 = arith.constant 7 : i32
    %c1 = arith.constant 1 : index
    %c0_149 = arith.constant 0 : index
    %c0_150 = arith.constant 0 : index
    %284 = vector.load %arg3[%c1, %c0_149, %c0_150] : memref<2x32x128xbf16, #tpu.memory_space<vmem>>, vector<1x32x128xbf16>
    %285 = vector.shape_cast %284 : vector<1x32x128xbf16> to vector<32x128xbf16>
    %c0_151 = arith.constant 0 : index
    %c0_152 = arith.constant 0 : index
    %c0_153 = arith.constant 0 : index
    %286 = vector.load %arg2[%c0_151, %c0_152, %c0_153] : memref<1x32x128xbf16, #tpu.memory_space<vmem>>, vector<1x32x128xbf16>
    %287 = vector.shape_cast %286 : vector<1x32x128xbf16> to vector<32x128xbf16>
    %c0_154 = arith.constant 0 : index
    %c0_155 = arith.constant 0 : index
    %c0_156 = arith.constant 0 : index
    %288 = vector.load %arg4[%c0_154, %c0_155, %c0_156] : memref<1x1x128xf32, #tpu.memory_space<vmem>>, vector<1x1x128xf32>
    %289 = vector.shape_cast %288 : vector<1x1x128xf32> to vector<1x128xf32>
    %c0_i32 = arith.constant 0 : i32
    %290 = arith.index_cast %c0_i32 : i32 to index
    %c0_157 = arith.constant 0 : index
    %c0_158 = arith.constant 0 : index
    %291 = vector.load %arg9[%290, %c0_157, %c0_158] : memref<8x8x32xbf16, #tpu.memory_space<vmem>>, vector<1x8x32xbf16>
    %292 = vector.shape_cast %291 : vector<1x8x32xbf16> to vector<8x32xbf16>
    %cst_159 = arith.constant dense<0.000000e+00> : vector<8x128xf32>
    %293 = tpu.matmul %292, %287, %cst_159 {dimension_numbers = #tpu.dot_dimension_numbers<[1], [0], [0], [1], [0, 0, 1, 1], [], []>} : vector<8x32xbf16>, vector<32x128xbf16>, vector<8x128xf32> -> vector<8x128xf32>
    %294 = vector.broadcast %289 : vector<1x128xf32> to vector<8x128xf32>
    %295 = arith.addf %293, %294 : vector<8x128xf32>
    %296 = arith.index_cast %c0_i32 : i32 to index
    %c0_160 = arith.constant 0 : index
    %c0_161 = arith.constant 0 : index
    %297 = vector.load %arg8[%296, %c0_160, %c0_161] : memref<8x8x128xf32, #tpu.memory_space<vmem>>, vector<1x8x128xf32>
    %298 = vector.shape_cast %297 : vector<1x8x128xf32> to vector<8x128xf32>
    %299 = vector.shape_cast %295 : vector<8x128xf32> to vector<1x8x128xf32>
    tpu.vector_store %arg8[%296, %c0_160, %c0_161], %299 {strides = array<i32>} : memref<8x8x128xf32, #tpu.memory_space<vmem>>, vector<1x8x128xf32>,
    %c1_i32_162 = arith.constant 1 : i32
    %300 = arith.index_cast %c1_i32_162 : i32 to index
    %c0_163 = arith.constant 0 : index
    %c0_164 = arith.constant 0 : index
    %301 = vector.load %arg9[%300, %c0_163, %c0_164] : memref<8x8x32xbf16, #tpu.memory_space<vmem>>, vector<1x8x32xbf16>
    %302 = vector.shape_cast %301 : vector<1x8x32xbf16> to vector<8x32xbf16>
    %cst_165 = arith.constant dense<0.000000e+00> : vector<8x128xf32>
    %303 = tpu.matmul %302, %287, %cst_165 {dimension_numbers = #tpu.dot_dimension_numbers<[1], [0], [0], [1], [0, 0, 1, 1], [], []>} : vector<8x32xbf16>, vector<32x128xbf16>, vector<8x128xf32> -> vector<8x128xf32>
    %304 = vector.broadcast %289 : vector<1x128xf32> to vector<8x128xf32>
    %305 = arith.addf %303, %304 : vector<8x128xf32>
    %306 = arith.index_cast %c1_i32_162 : i32 to index
    %c0_166 = arith.constant 0 : index
    %c0_167 = arith.constant 0 : index
    %307 = vector.load %arg8[%306, %c0_166, %c0_167] : memref<8x8x128xf32, #tpu.memory_space<vmem>>, vector<1x8x128xf32>
    %308 = vector.shape_cast %307 : vector<1x8x128xf32> to vector<8x128xf32>
    %309 = vector.shape_cast %305 : vector<8x128xf32> to vector<1x8x128xf32>
    tpu.vector_store %arg8[%306, %c0_166, %c0_167], %309 {strides = array<i32>} : memref<8x8x128xf32, #tpu.memory_space<vmem>>, vector<1x8x128xf32>,
    %c2_i32_168 = arith.constant 2 : i32
    %310 = arith.index_cast %c2_i32_168 : i32 to index
    %c0_169 = arith.constant 0 : index
    %c0_170 = arith.constant 0 : index
    %311 = vector.load %arg9[%310, %c0_169, %c0_170] : memref<8x8x32xbf16, #tpu.memory_space<vmem>>, vector<1x8x32xbf16>
    %312 = vector.shape_cast %311 : vector<1x8x32xbf16> to vector<8x32xbf16>
    %cst_171 = arith.constant dense<0.000000e+00> : vector<8x128xf32>
    %313 = tpu.matmul %312, %287, %cst_171 {dimension_numbers = #tpu.dot_dimension_numbers<[1], [0], [0], [1], [0, 0, 1, 1], [], []>} : vector<8x32xbf16>, vector<32x128xbf16>, vector<8x128xf32> -> vector<8x128xf32>
    %314 = vector.broadcast %289 : vector<1x128xf32> to vector<8x128xf32>
    %315 = arith.addf %313, %314 : vector<8x128xf32>
    %316 = arith.index_cast %c2_i32_168 : i32 to index
    %c0_172 = arith.constant 0 : index
    %c0_173 = arith.constant 0 : index
    %317 = vector.load %arg8[%316, %c0_172, %c0_173] : memref<8x8x128xf32, #tpu.memory_space<vmem>>, vector<1x8x128xf32>
    %318 = vector.shape_cast %317 : vector<1x8x128xf32> to vector<8x128xf32>
    %319 = vector.shape_cast %315 : vector<8x128xf32> to vector<1x8x128xf32>
    tpu.vector_store %arg8[%316, %c0_172, %c0_173], %319 {strides = array<i32>} : memref<8x8x128xf32, #tpu.memory_space<vmem>>, vector<1x8x128xf32>,
    %c3_i32_174 = arith.constant 3 : i32
    %320 = arith.index_cast %c3_i32_174 : i32 to index
    %c0_175 = arith.constant 0 : index
    %c0_176 = arith.constant 0 : index
    %321 = vector.load %arg9[%320, %c0_175, %c0_176] : memref<8x8x32xbf16, #tpu.memory_space<vmem>>, vector<1x8x32xbf16>
    %322 = vector.shape_cast %321 : vector<1x8x32xbf16> to vector<8x32xbf16>
    %cst_177 = arith.constant dense<0.000000e+00> : vector<8x128xf32>
    %323 = tpu.matmul %322, %287, %cst_177 {dimension_numbers = #tpu.dot_dimension_numbers<[1], [0], [0], [1], [0, 0, 1, 1], [], []>} : vector<8x32xbf16>, vector<32x128xbf16>, vector<8x128xf32> -> vector<8x128xf32>
    %324 = vector.broadcast %289 : vector<1x128xf32> to vector<8x128xf32>
    %325 = arith.addf %323, %324 : vector<8x128xf32>
    %326 = arith.index_cast %c3_i32_174 : i32 to index
    %c0_178 = arith.constant 0 : index
    %c0_179 = arith.constant 0 : index
    %327 = vector.load %arg8[%326, %c0_178, %c0_179] : memref<8x8x128xf32, #tpu.memory_space<vmem>>, vector<1x8x128xf32>
    %328 = vector.shape_cast %327 : vector<1x8x128xf32> to vector<8x128xf32>
    %329 = vector.shape_cast %325 : vector<8x128xf32> to vector<1x8x128xf32>
    tpu.vector_store %arg8[%326, %c0_178, %c0_179], %329 {strides = array<i32>} : memref<8x8x128xf32, #tpu.memory_space<vmem>>, vector<1x8x128xf32>,
    %c4_i32_180 = arith.constant 4 : i32
    %330 = arith.index_cast %c4_i32_180 : i32 to index
    %c0_181 = arith.constant 0 : index
    %c0_182 = arith.constant 0 : index
    %331 = vector.load %arg9[%330, %c0_181, %c0_182] : memref<8x8x32xbf16, #tpu.memory_space<vmem>>, vector<1x8x32xbf16>
    %332 = vector.shape_cast %331 : vector<1x8x32xbf16> to vector<8x32xbf16>
    %cst_183 = arith.constant dense<0.000000e+00> : vector<8x128xf32>
    %333 = tpu.matmul %332, %287, %cst_183 {dimension_numbers = #tpu.dot_dimension_numbers<[1], [0], [0], [1], [0, 0, 1, 1], [], []>} : vector<8x32xbf16>, vector<32x128xbf16>, vector<8x128xf32> -> vector<8x128xf32>
    %334 = vector.broadcast %289 : vector<1x128xf32> to vector<8x128xf32>
    %335 = arith.addf %333, %334 : vector<8x128xf32>
    %336 = arith.index_cast %c4_i32_180 : i32 to index
    %c0_184 = arith.constant 0 : index
    %c0_185 = arith.constant 0 : index
    %337 = vector.load %arg8[%336, %c0_184, %c0_185] : memref<8x8x128xf32, #tpu.memory_space<vmem>>, vector<1x8x128xf32>
    %338 = vector.shape_cast %337 : vector<1x8x128xf32> to vector<8x128xf32>
    %339 = vector.shape_cast %335 : vector<8x128xf32> to vector<1x8x128xf32>
    tpu.vector_store %arg8[%336, %c0_184, %c0_185], %339 {strides = array<i32>} : memref<8x8x128xf32, #tpu.memory_space<vmem>>, vector<1x8x128xf32>,
    %c5_i32_186 = arith.constant 5 : i32
    %340 = arith.index_cast %c5_i32_186 : i32 to index
    %c0_187 = arith.constant 0 : index
    %c0_188 = arith.constant 0 : index
    %341 = vector.load %arg9[%340, %c0_187, %c0_188] : memref<8x8x32xbf16, #tpu.memory_space<vmem>>, vector<1x8x32xbf16>
    %342 = vector.shape_cast %341 : vector<1x8x32xbf16> to vector<8x32xbf16>
    %cst_189 = arith.constant dense<0.000000e+00> : vector<8x128xf32>
    %343 = tpu.matmul %342, %287, %cst_189 {dimension_numbers = #tpu.dot_dimension_numbers<[1], [0], [0], [1], [0, 0, 1, 1], [], []>} : vector<8x32xbf16>, vector<32x128xbf16>, vector<8x128xf32> -> vector<8x128xf32>
    %344 = vector.broadcast %289 : vector<1x128xf32> to vector<8x128xf32>
    %345 = arith.addf %343, %344 : vector<8x128xf32>
    %346 = arith.index_cast %c5_i32_186 : i32 to index
    %c0_190 = arith.constant 0 : index
    %c0_191 = arith.constant 0 : index
    %347 = vector.load %arg8[%346, %c0_190, %c0_191] : memref<8x8x128xf32, #tpu.memory_space<vmem>>, vector<1x8x128xf32>
    %348 = vector.shape_cast %347 : vector<1x8x128xf32> to vector<8x128xf32>
    %349 = vector.shape_cast %345 : vector<8x128xf32> to vector<1x8x128xf32>
    tpu.vector_store %arg8[%346, %c0_190, %c0_191], %349 {strides = array<i32>} : memref<8x8x128xf32, #tpu.memory_space<vmem>>, vector<1x8x128xf32>,
    %c6_i32_192 = arith.constant 6 : i32
    %350 = arith.index_cast %c6_i32_192 : i32 to index
    %c0_193 = arith.constant 0 : index
    %c0_194 = arith.constant 0 : index
    %351 = vector.load %arg9[%350, %c0_193, %c0_194] : memref<8x8x32xbf16, #tpu.memory_space<vmem>>, vector<1x8x32xbf16>
    %352 = vector.shape_cast %351 : vector<1x8x32xbf16> to vector<8x32xbf16>
    %cst_195 = arith.constant dense<0.000000e+00> : vector<8x128xf32>
    %353 = tpu.matmul %352, %287, %cst_195 {dimension_numbers = #tpu.dot_dimension_numbers<[1], [0], [0], [1], [0, 0, 1, 1], [], []>} : vector<8x32xbf16>, vector<32x128xbf16>, vector<8x128xf32> -> vector<8x128xf32>
    %354 = vector.broadcast %289 : vector<1x128xf32> to vector<8x128xf32>
    %355 = arith.addf %353, %354 : vector<8x128xf32>
    %356 = arith.index_cast %c6_i32_192 : i32 to index
    %c0_196 = arith.constant 0 : index
    %c0_197 = arith.constant 0 : index
    %357 = vector.load %arg8[%356, %c0_196, %c0_197] : memref<8x8x128xf32, #tpu.memory_space<vmem>>, vector<1x8x128xf32>
    %358 = vector.shape_cast %357 : vector<1x8x128xf32> to vector<8x128xf32>
    %359 = vector.shape_cast %355 : vector<8x128xf32> to vector<1x8x128xf32>
    tpu.vector_store %arg8[%356, %c0_196, %c0_197], %359 {strides = array<i32>} : memref<8x8x128xf32, #tpu.memory_space<vmem>>, vector<1x8x128xf32>,
    %c7_i32_198 = arith.constant 7 : i32
    %360 = arith.index_cast %c7_i32_198 : i32 to index
    %c0_199 = arith.constant 0 : index
    %c0_200 = arith.constant 0 : index
    %361 = vector.load %arg9[%360, %c0_199, %c0_200] : memref<8x8x32xbf16, #tpu.memory_space<vmem>>, vector<1x8x32xbf16>
    %362 = vector.shape_cast %361 : vector<1x8x32xbf16> to vector<8x32xbf16>
    %cst_201 = arith.constant dense<0.000000e+00> : vector<8x128xf32>
    %363 = tpu.matmul %362, %287, %cst_201 {dimension_numbers = #tpu.dot_dimension_numbers<[1], [0], [0], [1], [0, 0, 1, 1], [], []>} : vector<8x32xbf16>, vector<32x128xbf16>, vector<8x128xf32> -> vector<8x128xf32>
    %364 = vector.broadcast %289 : vector<1x128xf32> to vector<8x128xf32>
    %365 = arith.addf %363, %364 : vector<8x128xf32>
    %366 = arith.index_cast %c7_i32_198 : i32 to index
    %c0_202 = arith.constant 0 : index
    %c0_203 = arith.constant 0 : index
    %367 = vector.load %arg8[%366, %c0_202, %c0_203] : memref<8x8x128xf32, #tpu.memory_space<vmem>>, vector<1x8x128xf32>
    %368 = vector.shape_cast %367 : vector<1x8x128xf32> to vector<8x128xf32>
    %369 = vector.shape_cast %365 : vector<8x128xf32> to vector<1x8x128xf32>
    tpu.vector_store %arg8[%366, %c0_202, %c0_203], %369 {strides = array<i32>} : memref<8x8x128xf32, #tpu.memory_space<vmem>>, vector<1x8x128xf32>,
    %c8_i32 = arith.constant 8 : i32
    %c0_204 = arith.constant 0 : index
    %c0_205 = arith.constant 0 : index
    %c0_206 = arith.constant 0 : index
    %370 = vector.load %arg8[%c0_204, %c0_205, %c0_206] : memref<8x8x128xf32, #tpu.memory_space<vmem>>, vector<1x8x128xf32>
    %371 = vector.shape_cast %370 : vector<1x8x128xf32> to vector<8x128xf32>
    %372 = math.tanh %371 : vector<8x128xf32>
    %373 = vector.extract_strided_slice %372 {offsets = [0, 0], sizes = [8, 32], strides = [1, 1]} : vector<8x128xf32> to vector<8x32xf32>
    %cst_207 = arith.constant 5.000000e-01 : f32
    %374 = vector.broadcast %cst_207 : f32 to vector<8x32xf32>
    %375 = arith.mulf %374, %373 : vector<8x32xf32>
    %cst_208 = arith.constant 5.000000e-01 : f32
    %376 = vector.broadcast %cst_208 : f32 to vector<8x32xf32>
    %377 = arith.addf %375, %376 : vector<8x32xf32>
    %378 = vector.extract_strided_slice %372 {offsets = [0, 64], sizes = [8, 32], strides = [1, 1]} : vector<8x128xf32> to vector<8x32xf32>
    %379 = arith.mulf %377, %378 : vector<8x32xf32>
    %380 = vector.extract_strided_slice %372 {offsets = [0, 96], sizes = [8, 32], strides = [1, 1]} : vector<8x128xf32> to vector<8x32xf32>
    %cst_209 = arith.constant 5.000000e-01 : f32
    %381 = vector.broadcast %cst_209 : f32 to vector<8x32xf32>
    %382 = arith.mulf %381, %380 : vector<8x32xf32>
    %cst_210 = arith.constant 5.000000e-01 : f32
    %383 = vector.broadcast %cst_210 : f32 to vector<8x32xf32>
    %384 = arith.addf %382, %383 : vector<8x32xf32>
    %385 = math.tanh %379 : vector<8x32xf32>
    %386 = arith.mulf %384, %385 : vector<8x32xf32>
    %c0_211 = arith.constant 0 : index
    %c0_212 = arith.constant 0 : index
    %387 = vector.load %arg11[%c0_211, %c0_212] : memref<8x32xf32, #tpu.memory_space<vmem>>, vector<8x32xf32>
    tpu.vector_store %arg11[%c0_211, %c0_212], %379 {strides = array<i32>} : memref<8x32xf32, #tpu.memory_space<vmem>>, vector<8x32xf32>,
    %c0_213 = arith.constant 0 : index
    %c0_214 = arith.constant 0 : index
    %388 = vector.load %arg10[%c0_213, %c0_214] : memref<8x32xf32, #tpu.memory_space<vmem>>, vector<8x32xf32>
    tpu.vector_store %arg10[%c0_213, %c0_214], %386 {strides = array<i32>} : memref<8x32xf32, #tpu.memory_space<vmem>>, vector<8x32xf32>,
    %c1_i32_215 = arith.constant 1 : i32
    %389 = arith.index_cast %c1_i32_215 : i32 to index
    %c0_216 = arith.constant 0 : index
    %c0_217 = arith.constant 0 : index
    %390 = vector.load %arg8[%389, %c0_216, %c0_217] : memref<8x8x128xf32, #tpu.memory_space<vmem>>, vector<1x8x128xf32>
    %391 = vector.shape_cast %390 : vector<1x8x128xf32> to vector<8x128xf32>
    %c0_218 = arith.constant 0 : index
    %c0_219 = arith.constant 0 : index
    %392 = vector.load %arg10[%c0_218, %c0_219] : memref<8x32xf32, #tpu.memory_space<vmem>>, vector<8x32xf32>
    %393 = arith.truncf %392 : vector<8x32xf32> to vector<8x32xbf16>
    %cst_220 = arith.constant dense<0.000000e+00> : vector<8x128xf32>
    %394 = tpu.matmul %393, %285, %cst_220 {dimension_numbers = #tpu.dot_dimension_numbers<[1], [0], [0], [1], [0, 0, 1, 1], [], []>} : vector<8x32xbf16>, vector<32x128xbf16>, vector<8x128xf32> -> vector<8x128xf32>
    %395 = arith.addf %391, %394 : vector<8x128xf32>
    %396 = math.tanh %395 : vector<8x128xf32>
    %397 = vector.extract_strided_slice %396 {offsets = [0, 32], sizes = [8, 32], strides = [1, 1]} : vector<8x128xf32> to vector<8x32xf32>
    %cst_221 = arith.constant 5.000000e-01 : f32
    %398 = vector.broadcast %cst_221 : f32 to vector<8x32xf32>
    %399 = arith.mulf %398, %397 : vector<8x32xf32>
    %cst_222 = arith.constant 5.000000e-01 : f32
    %400 = vector.broadcast %cst_222 : f32 to vector<8x32xf32>
    %401 = arith.addf %399, %400 : vector<8x32xf32>
    %c0_223 = arith.constant 0 : index
    %c0_224 = arith.constant 0 : index
    %402 = vector.load %arg11[%c0_223, %c0_224] : memref<8x32xf32, #tpu.memory_space<vmem>>, vector<8x32xf32>
    %403 = arith.mulf %401, %402 : vector<8x32xf32>
    %404 = vector.extract_strided_slice %396 {offsets = [0, 0], sizes = [8, 32], strides = [1, 1]} : vector<8x128xf32> to vector<8x32xf32>
    %cst_225 = arith.constant 5.000000e-01 : f32
    %405 = vector.broadcast %cst_225 : f32 to vector<8x32xf32>
    %406 = arith.mulf %405, %404 : vector<8x32xf32>
    %cst_226 = arith.constant 5.000000e-01 : f32
    %407 = vector.broadcast %cst_226 : f32 to vector<8x32xf32>
    %408 = arith.addf %406, %407 : vector<8x32xf32>
    %409 = vector.extract_strided_slice %396 {offsets = [0, 64], sizes = [8, 32], strides = [1, 1]} : vector<8x128xf32> to vector<8x32xf32>
    %410 = arith.mulf %408, %409 : vector<8x32xf32>
    %411 = arith.addf %403, %410 : vector<8x32xf32>
    %412 = vector.extract_strided_slice %396 {offsets = [0, 96], sizes = [8, 32], strides = [1, 1]} : vector<8x128xf32> to vector<8x32xf32>
    %cst_227 = arith.constant 5.000000e-01 : f32
    %413 = vector.broadcast %cst_227 : f32 to vector<8x32xf32>
    %414 = arith.mulf %413, %412 : vector<8x32xf32>
    %cst_228 = arith.constant 5.000000e-01 : f32
    %415 = vector.broadcast %cst_228 : f32 to vector<8x32xf32>
    %416 = arith.addf %414, %415 : vector<8x32xf32>
    %417 = math.tanh %411 : vector<8x32xf32>
    %418 = arith.mulf %416, %417 : vector<8x32xf32>
    %c0_229 = arith.constant 0 : index
    %c0_230 = arith.constant 0 : index
    %419 = vector.load %arg11[%c0_229, %c0_230] : memref<8x32xf32, #tpu.memory_space<vmem>>, vector<8x32xf32>
    tpu.vector_store %arg11[%c0_229, %c0_230], %411 {strides = array<i32>} : memref<8x32xf32, #tpu.memory_space<vmem>>, vector<8x32xf32>,
    %c0_231 = arith.constant 0 : index
    %c0_232 = arith.constant 0 : index
    %420 = vector.load %arg10[%c0_231, %c0_232] : memref<8x32xf32, #tpu.memory_space<vmem>>, vector<8x32xf32>
    tpu.vector_store %arg10[%c0_231, %c0_232], %418 {strides = array<i32>} : memref<8x32xf32, #tpu.memory_space<vmem>>, vector<8x32xf32>,
    %c2_i32_233 = arith.constant 2 : i32
    %421 = arith.index_cast %c2_i32_233 : i32 to index
    %c0_234 = arith.constant 0 : index
    %c0_235 = arith.constant 0 : index
    %422 = vector.load %arg8[%421, %c0_234, %c0_235] : memref<8x8x128xf32, #tpu.memory_space<vmem>>, vector<1x8x128xf32>
    %423 = vector.shape_cast %422 : vector<1x8x128xf32> to vector<8x128xf32>
    %c0_236 = arith.constant 0 : index
    %c0_237 = arith.constant 0 : index
    %424 = vector.load %arg10[%c0_236, %c0_237] : memref<8x32xf32, #tpu.memory_space<vmem>>, vector<8x32xf32>
    %425 = arith.truncf %424 : vector<8x32xf32> to vector<8x32xbf16>
    %cst_238 = arith.constant dense<0.000000e+00> : vector<8x128xf32>
    %426 = tpu.matmul %425, %285, %cst_238 {dimension_numbers = #tpu.dot_dimension_numbers<[1], [0], [0], [1], [0, 0, 1, 1], [], []>} : vector<8x32xbf16>, vector<32x128xbf16>, vector<8x128xf32> -> vector<8x128xf32>
    %427 = arith.addf %423, %426 : vector<8x128xf32>
    %428 = math.tanh %427 : vector<8x128xf32>
    %429 = vector.extract_strided_slice %428 {offsets = [0, 32], sizes = [8, 32], strides = [1, 1]} : vector<8x128xf32> to vector<8x32xf32>
    %cst_239 = arith.constant 5.000000e-01 : f32
    %430 = vector.broadcast %cst_239 : f32 to vector<8x32xf32>
    %431 = arith.mulf %430, %429 : vector<8x32xf32>
    %cst_240 = arith.constant 5.000000e-01 : f32
    %432 = vector.broadcast %cst_240 : f32 to vector<8x32xf32>
    %433 = arith.addf %431, %432 : vector<8x32xf32>
    %c0_241 = arith.constant 0 : index
    %c0_242 = arith.constant 0 : index
    %434 = vector.load %arg11[%c0_241, %c0_242] : memref<8x32xf32, #tpu.memory_space<vmem>>, vector<8x32xf32>
    %435 = arith.mulf %433, %434 : vector<8x32xf32>
    %436 = vector.extract_strided_slice %428 {offsets = [0, 0], sizes = [8, 32], strides = [1, 1]} : vector<8x128xf32> to vector<8x32xf32>
    %cst_243 = arith.constant 5.000000e-01 : f32
    %437 = vector.broadcast %cst_243 : f32 to vector<8x32xf32>
    %438 = arith.mulf %437, %436 : vector<8x32xf32>
    %cst_244 = arith.constant 5.000000e-01 : f32
    %439 = vector.broadcast %cst_244 : f32 to vector<8x32xf32>
    %440 = arith.addf %438, %439 : vector<8x32xf32>
    %441 = vector.extract_strided_slice %428 {offsets = [0, 64], sizes = [8, 32], strides = [1, 1]} : vector<8x128xf32> to vector<8x32xf32>
    %442 = arith.mulf %440, %441 : vector<8x32xf32>
    %443 = arith.addf %435, %442 : vector<8x32xf32>
    %444 = vector.extract_strided_slice %428 {offsets = [0, 96], sizes = [8, 32], strides = [1, 1]} : vector<8x128xf32> to vector<8x32xf32>
    %cst_245 = arith.constant 5.000000e-01 : f32
    %445 = vector.broadcast %cst_245 : f32 to vector<8x32xf32>
    %446 = arith.mulf %445, %444 : vector<8x32xf32>
    %cst_246 = arith.constant 5.000000e-01 : f32
    %447 = vector.broadcast %cst_246 : f32 to vector<8x32xf32>
    %448 = arith.addf %446, %447 : vector<8x32xf32>
    %449 = math.tanh %443 : vector<8x32xf32>
    %450 = arith.mulf %448, %449 : vector<8x32xf32>
    %c0_247 = arith.constant 0 : index
    %c0_248 = arith.constant 0 : index
    %451 = vector.load %arg11[%c0_247, %c0_248] : memref<8x32xf32, #tpu.memory_space<vmem>>, vector<8x32xf32>
    tpu.vector_store %arg11[%c0_247, %c0_248], %443 {strides = array<i32>} : memref<8x32xf32, #tpu.memory_space<vmem>>, vector<8x32xf32>,
    %c0_249 = arith.constant 0 : index
    %c0_250 = arith.constant 0 : index
    %452 = vector.load %arg10[%c0_249, %c0_250] : memref<8x32xf32, #tpu.memory_space<vmem>>, vector<8x32xf32>
    tpu.vector_store %arg10[%c0_249, %c0_250], %450 {strides = array<i32>} : memref<8x32xf32, #tpu.memory_space<vmem>>, vector<8x32xf32>,
    %c3_i32_251 = arith.constant 3 : i32
    %453 = arith.index_cast %c3_i32_251 : i32 to index
    %c0_252 = arith.constant 0 : index
    %c0_253 = arith.constant 0 : index
    %454 = vector.load %arg8[%453, %c0_252, %c0_253] : memref<8x8x128xf32, #tpu.memory_space<vmem>>, vector<1x8x128xf32>
    %455 = vector.shape_cast %454 : vector<1x8x128xf32> to vector<8x128xf32>
    %c0_254 = arith.constant 0 : index
    %c0_255 = arith.constant 0 : index
    %456 = vector.load %arg10[%c0_254, %c0_255] : memref<8x32xf32, #tpu.memory_space<vmem>>, vector<8x32xf32>
    %457 = arith.truncf %456 : vector<8x32xf32> to vector<8x32xbf16>
    %cst_256 = arith.constant dense<0.000000e+00> : vector<8x128xf32>
    %458 = tpu.matmul %457, %285, %cst_256 {dimension_numbers = #tpu.dot_dimension_numbers<[1], [0], [0], [1], [0, 0, 1, 1], [], []>} : vector<8x32xbf16>, vector<32x128xbf16>, vector<8x128xf32> -> vector<8x128xf32>
    %459 = arith.addf %455, %458 : vector<8x128xf32>
    %460 = math.tanh %459 : vector<8x128xf32>
    %461 = vector.extract_strided_slice %460 {offsets = [0, 32], sizes = [8, 32], strides = [1, 1]} : vector<8x128xf32> to vector<8x32xf32>
    %cst_257 = arith.constant 5.000000e-01 : f32
    %462 = vector.broadcast %cst_257 : f32 to vector<8x32xf32>
    %463 = arith.mulf %462, %461 : vector<8x32xf32>
    %cst_258 = arith.constant 5.000000e-01 : f32
    %464 = vector.broadcast %cst_258 : f32 to vector<8x32xf32>
    %465 = arith.addf %463, %464 : vector<8x32xf32>
    %c0_259 = arith.constant 0 : index
    %c0_260 = arith.constant 0 : index
    %466 = vector.load %arg11[%c0_259, %c0_260] : memref<8x32xf32, #tpu.memory_space<vmem>>, vector<8x32xf32>
    %467 = arith.mulf %465, %466 : vector<8x32xf32>
    %468 = vector.extract_strided_slice %460 {offsets = [0, 0], sizes = [8, 32], strides = [1, 1]} : vector<8x128xf32> to vector<8x32xf32>
    %cst_261 = arith.constant 5.000000e-01 : f32
    %469 = vector.broadcast %cst_261 : f32 to vector<8x32xf32>
    %470 = arith.mulf %469, %468 : vector<8x32xf32>
    %cst_262 = arith.constant 5.000000e-01 : f32
    %471 = vector.broadcast %cst_262 : f32 to vector<8x32xf32>
    %472 = arith.addf %470, %471 : vector<8x32xf32>
    %473 = vector.extract_strided_slice %460 {offsets = [0, 64], sizes = [8, 32], strides = [1, 1]} : vector<8x128xf32> to vector<8x32xf32>
    %474 = arith.mulf %472, %473 : vector<8x32xf32>
    %475 = arith.addf %467, %474 : vector<8x32xf32>
    %476 = vector.extract_strided_slice %460 {offsets = [0, 96], sizes = [8, 32], strides = [1, 1]} : vector<8x128xf32> to vector<8x32xf32>
    %cst_263 = arith.constant 5.000000e-01 : f32
    %477 = vector.broadcast %cst_263 : f32 to vector<8x32xf32>
    %478 = arith.mulf %477, %476 : vector<8x32xf32>
    %cst_264 = arith.constant 5.000000e-01 : f32
    %479 = vector.broadcast %cst_264 : f32 to vector<8x32xf32>
    %480 = arith.addf %478, %479 : vector<8x32xf32>
    %481 = math.tanh %475 : vector<8x32xf32>
    %482 = arith.mulf %480, %481 : vector<8x32xf32>
    %c0_265 = arith.constant 0 : index
    %c0_266 = arith.constant 0 : index
    %483 = vector.load %arg11[%c0_265, %c0_266] : memref<8x32xf32, #tpu.memory_space<vmem>>, vector<8x32xf32>
    tpu.vector_store %arg11[%c0_265, %c0_266], %475 {strides = array<i32>} : memref<8x32xf32, #tpu.memory_space<vmem>>, vector<8x32xf32>,
    %c0_267 = arith.constant 0 : index
    %c0_268 = arith.constant 0 : index
    %484 = vector.load %arg10[%c0_267, %c0_268] : memref<8x32xf32, #tpu.memory_space<vmem>>, vector<8x32xf32>
    tpu.vector_store %arg10[%c0_267, %c0_268], %482 {strides = array<i32>} : memref<8x32xf32, #tpu.memory_space<vmem>>, vector<8x32xf32>,
    %c4_i32_269 = arith.constant 4 : i32
    %485 = arith.index_cast %c4_i32_269 : i32 to index
    %c0_270 = arith.constant 0 : index
    %c0_271 = arith.constant 0 : index
    %486 = vector.load %arg8[%485, %c0_270, %c0_271] : memref<8x8x128xf32, #tpu.memory_space<vmem>>, vector<1x8x128xf32>
    %487 = vector.shape_cast %486 : vector<1x8x128xf32> to vector<8x128xf32>
    %c0_272 = arith.constant 0 : index
    %c0_273 = arith.constant 0 : index
    %488 = vector.load %arg10[%c0_272, %c0_273] : memref<8x32xf32, #tpu.memory_space<vmem>>, vector<8x32xf32>
    %489 = arith.truncf %488 : vector<8x32xf32> to vector<8x32xbf16>
    %cst_274 = arith.constant dense<0.000000e+00> : vector<8x128xf32>
    %490 = tpu.matmul %489, %285, %cst_274 {dimension_numbers = #tpu.dot_dimension_numbers<[1], [0], [0], [1], [0, 0, 1, 1], [], []>} : vector<8x32xbf16>, vector<32x128xbf16>, vector<8x128xf32> -> vector<8x128xf32>
    %491 = arith.addf %487, %490 : vector<8x128xf32>
    %492 = math.tanh %491 : vector<8x128xf32>
    %493 = vector.extract_strided_slice %492 {offsets = [0, 32], sizes = [8, 32], strides = [1, 1]} : vector<8x128xf32> to vector<8x32xf32>
    %cst_275 = arith.constant 5.000000e-01 : f32
    %494 = vector.broadcast %cst_275 : f32 to vector<8x32xf32>
    %495 = arith.mulf %494, %493 : vector<8x32xf32>
    %cst_276 = arith.constant 5.000000e-01 : f32
    %496 = vector.broadcast %cst_276 : f32 to vector<8x32xf32>
    %497 = arith.addf %495, %496 : vector<8x32xf32>
    %c0_277 = arith.constant 0 : index
    %c0_278 = arith.constant 0 : index
    %498 = vector.load %arg11[%c0_277, %c0_278] : memref<8x32xf32, #tpu.memory_space<vmem>>, vector<8x32xf32>
    %499 = arith.mulf %497, %498 : vector<8x32xf32>
    %500 = vector.extract_strided_slice %492 {offsets = [0, 0], sizes = [8, 32], strides = [1, 1]} : vector<8x128xf32> to vector<8x32xf32>
    %cst_279 = arith.constant 5.000000e-01 : f32
    %501 = vector.broadcast %cst_279 : f32 to vector<8x32xf32>
    %502 = arith.mulf %501, %500 : vector<8x32xf32>
    %cst_280 = arith.constant 5.000000e-01 : f32
    %503 = vector.broadcast %cst_280 : f32 to vector<8x32xf32>
    %504 = arith.addf %502, %503 : vector<8x32xf32>
    %505 = vector.extract_strided_slice %492 {offsets = [0, 64], sizes = [8, 32], strides = [1, 1]} : vector<8x128xf32> to vector<8x32xf32>
    %506 = arith.mulf %504, %505 : vector<8x32xf32>
    %507 = arith.addf %499, %506 : vector<8x32xf32>
    %508 = vector.extract_strided_slice %492 {offsets = [0, 96], sizes = [8, 32], strides = [1, 1]} : vector<8x128xf32> to vector<8x32xf32>
    %cst_281 = arith.constant 5.000000e-01 : f32
    %509 = vector.broadcast %cst_281 : f32 to vector<8x32xf32>
    %510 = arith.mulf %509, %508 : vector<8x32xf32>
    %cst_282 = arith.constant 5.000000e-01 : f32
    %511 = vector.broadcast %cst_282 : f32 to vector<8x32xf32>
    %512 = arith.addf %510, %511 : vector<8x32xf32>
    %513 = math.tanh %507 : vector<8x32xf32>
    %514 = arith.mulf %512, %513 : vector<8x32xf32>
    %c0_283 = arith.constant 0 : index
    %c0_284 = arith.constant 0 : index
    %515 = vector.load %arg11[%c0_283, %c0_284] : memref<8x32xf32, #tpu.memory_space<vmem>>, vector<8x32xf32>
    tpu.vector_store %arg11[%c0_283, %c0_284], %507 {strides = array<i32>} : memref<8x32xf32, #tpu.memory_space<vmem>>, vector<8x32xf32>,
    %c0_285 = arith.constant 0 : index
    %c0_286 = arith.constant 0 : index
    %516 = vector.load %arg10[%c0_285, %c0_286] : memref<8x32xf32, #tpu.memory_space<vmem>>, vector<8x32xf32>
    tpu.vector_store %arg10[%c0_285, %c0_286], %514 {strides = array<i32>} : memref<8x32xf32, #tpu.memory_space<vmem>>, vector<8x32xf32>,
    %c5_i32_287 = arith.constant 5 : i32
    %517 = arith.index_cast %c5_i32_287 : i32 to index
    %c0_288 = arith.constant 0 : index
    %c0_289 = arith.constant 0 : index
    %518 = vector.load %arg8[%517, %c0_288, %c0_289] : memref<8x8x128xf32, #tpu.memory_space<vmem>>, vector<1x8x128xf32>
    %519 = vector.shape_cast %518 : vector<1x8x128xf32> to vector<8x128xf32>
    %c0_290 = arith.constant 0 : index
    %c0_291 = arith.constant 0 : index
    %520 = vector.load %arg10[%c0_290, %c0_291] : memref<8x32xf32, #tpu.memory_space<vmem>>, vector<8x32xf32>
    %521 = arith.truncf %520 : vector<8x32xf32> to vector<8x32xbf16>
    %cst_292 = arith.constant dense<0.000000e+00> : vector<8x128xf32>
    %522 = tpu.matmul %521, %285, %cst_292 {dimension_numbers = #tpu.dot_dimension_numbers<[1], [0], [0], [1], [0, 0, 1, 1], [], []>} : vector<8x32xbf16>, vector<32x128xbf16>, vector<8x128xf32> -> vector<8x128xf32>
    %523 = arith.addf %519, %522 : vector<8x128xf32>
    %524 = math.tanh %523 : vector<8x128xf32>
    %525 = vector.extract_strided_slice %524 {offsets = [0, 32], sizes = [8, 32], strides = [1, 1]} : vector<8x128xf32> to vector<8x32xf32>
    %cst_293 = arith.constant 5.000000e-01 : f32
    %526 = vector.broadcast %cst_293 : f32 to vector<8x32xf32>
    %527 = arith.mulf %526, %525 : vector<8x32xf32>
    %cst_294 = arith.constant 5.000000e-01 : f32
    %528 = vector.broadcast %cst_294 : f32 to vector<8x32xf32>
    %529 = arith.addf %527, %528 : vector<8x32xf32>
    %c0_295 = arith.constant 0 : index
    %c0_296 = arith.constant 0 : index
    %530 = vector.load %arg11[%c0_295, %c0_296] : memref<8x32xf32, #tpu.memory_space<vmem>>, vector<8x32xf32>
    %531 = arith.mulf %529, %530 : vector<8x32xf32>
    %532 = vector.extract_strided_slice %524 {offsets = [0, 0], sizes = [8, 32], strides = [1, 1]} : vector<8x128xf32> to vector<8x32xf32>
    %cst_297 = arith.constant 5.000000e-01 : f32
    %533 = vector.broadcast %cst_297 : f32 to vector<8x32xf32>
    %534 = arith.mulf %533, %532 : vector<8x32xf32>
    %cst_298 = arith.constant 5.000000e-01 : f32
    %535 = vector.broadcast %cst_298 : f32 to vector<8x32xf32>
    %536 = arith.addf %534, %535 : vector<8x32xf32>
    %537 = vector.extract_strided_slice %524 {offsets = [0, 64], sizes = [8, 32], strides = [1, 1]} : vector<8x128xf32> to vector<8x32xf32>
    %538 = arith.mulf %536, %537 : vector<8x32xf32>
    %539 = arith.addf %531, %538 : vector<8x32xf32>
    %540 = vector.extract_strided_slice %524 {offsets = [0, 96], sizes = [8, 32], strides = [1, 1]} : vector<8x128xf32> to vector<8x32xf32>
    %cst_299 = arith.constant 5.000000e-01 : f32
    %541 = vector.broadcast %cst_299 : f32 to vector<8x32xf32>
    %542 = arith.mulf %541, %540 : vector<8x32xf32>
    %cst_300 = arith.constant 5.000000e-01 : f32
    %543 = vector.broadcast %cst_300 : f32 to vector<8x32xf32>
    %544 = arith.addf %542, %543 : vector<8x32xf32>
    %545 = math.tanh %539 : vector<8x32xf32>
    %546 = arith.mulf %544, %545 : vector<8x32xf32>
    %c0_301 = arith.constant 0 : index
    %c0_302 = arith.constant 0 : index
    %547 = vector.load %arg11[%c0_301, %c0_302] : memref<8x32xf32, #tpu.memory_space<vmem>>, vector<8x32xf32>
    tpu.vector_store %arg11[%c0_301, %c0_302], %539 {strides = array<i32>} : memref<8x32xf32, #tpu.memory_space<vmem>>, vector<8x32xf32>,
    %c0_303 = arith.constant 0 : index
    %c0_304 = arith.constant 0 : index
    %548 = vector.load %arg10[%c0_303, %c0_304] : memref<8x32xf32, #tpu.memory_space<vmem>>, vector<8x32xf32>
    tpu.vector_store %arg10[%c0_303, %c0_304], %546 {strides = array<i32>} : memref<8x32xf32, #tpu.memory_space<vmem>>, vector<8x32xf32>,
    %c6_i32_305 = arith.constant 6 : i32
    %549 = arith.index_cast %c6_i32_305 : i32 to index
    %c0_306 = arith.constant 0 : index
    %c0_307 = arith.constant 0 : index
    %550 = vector.load %arg8[%549, %c0_306, %c0_307] : memref<8x8x128xf32, #tpu.memory_space<vmem>>, vector<1x8x128xf32>
    %551 = vector.shape_cast %550 : vector<1x8x128xf32> to vector<8x128xf32>
    %c0_308 = arith.constant 0 : index
    %c0_309 = arith.constant 0 : index
    %552 = vector.load %arg10[%c0_308, %c0_309] : memref<8x32xf32, #tpu.memory_space<vmem>>, vector<8x32xf32>
    %553 = arith.truncf %552 : vector<8x32xf32> to vector<8x32xbf16>
    %cst_310 = arith.constant dense<0.000000e+00> : vector<8x128xf32>
    %554 = tpu.matmul %553, %285, %cst_310 {dimension_numbers = #tpu.dot_dimension_numbers<[1], [0], [0], [1], [0, 0, 1, 1], [], []>} : vector<8x32xbf16>, vector<32x128xbf16>, vector<8x128xf32> -> vector<8x128xf32>
    %555 = arith.addf %551, %554 : vector<8x128xf32>
    %556 = math.tanh %555 : vector<8x128xf32>
    %557 = vector.extract_strided_slice %556 {offsets = [0, 32], sizes = [8, 32], strides = [1, 1]} : vector<8x128xf32> to vector<8x32xf32>
    %cst_311 = arith.constant 5.000000e-01 : f32
    %558 = vector.broadcast %cst_311 : f32 to vector<8x32xf32>
    %559 = arith.mulf %558, %557 : vector<8x32xf32>
    %cst_312 = arith.constant 5.000000e-01 : f32
    %560 = vector.broadcast %cst_312 : f32 to vector<8x32xf32>
    %561 = arith.addf %559, %560 : vector<8x32xf32>
    %c0_313 = arith.constant 0 : index
    %c0_314 = arith.constant 0 : index
    %562 = vector.load %arg11[%c0_313, %c0_314] : memref<8x32xf32, #tpu.memory_space<vmem>>, vector<8x32xf32>
    %563 = arith.mulf %561, %562 : vector<8x32xf32>
    %564 = vector.extract_strided_slice %556 {offsets = [0, 0], sizes = [8, 32], strides = [1, 1]} : vector<8x128xf32> to vector<8x32xf32>
    %cst_315 = arith.constant 5.000000e-01 : f32
    %565 = vector.broadcast %cst_315 : f32 to vector<8x32xf32>
    %566 = arith.mulf %565, %564 : vector<8x32xf32>
    %cst_316 = arith.constant 5.000000e-01 : f32
    %567 = vector.broadcast %cst_316 : f32 to vector<8x32xf32>
    %568 = arith.addf %566, %567 : vector<8x32xf32>
    %569 = vector.extract_strided_slice %556 {offsets = [0, 64], sizes = [8, 32], strides = [1, 1]} : vector<8x128xf32> to vector<8x32xf32>
    %570 = arith.mulf %568, %569 : vector<8x32xf32>
    %571 = arith.addf %563, %570 : vector<8x32xf32>
    %572 = vector.extract_strided_slice %556 {offsets = [0, 96], sizes = [8, 32], strides = [1, 1]} : vector<8x128xf32> to vector<8x32xf32>
    %cst_317 = arith.constant 5.000000e-01 : f32
    %573 = vector.broadcast %cst_317 : f32 to vector<8x32xf32>
    %574 = arith.mulf %573, %572 : vector<8x32xf32>
    %cst_318 = arith.constant 5.000000e-01 : f32
    %575 = vector.broadcast %cst_318 : f32 to vector<8x32xf32>
    %576 = arith.addf %574, %575 : vector<8x32xf32>
    %577 = math.tanh %571 : vector<8x32xf32>
    %578 = arith.mulf %576, %577 : vector<8x32xf32>
    %c0_319 = arith.constant 0 : index
    %c0_320 = arith.constant 0 : index
    %579 = vector.load %arg11[%c0_319, %c0_320] : memref<8x32xf32, #tpu.memory_space<vmem>>, vector<8x32xf32>
    tpu.vector_store %arg11[%c0_319, %c0_320], %571 {strides = array<i32>} : memref<8x32xf32, #tpu.memory_space<vmem>>, vector<8x32xf32>,
    %c0_321 = arith.constant 0 : index
    %c0_322 = arith.constant 0 : index
    %580 = vector.load %arg10[%c0_321, %c0_322] : memref<8x32xf32, #tpu.memory_space<vmem>>, vector<8x32xf32>
    tpu.vector_store %arg10[%c0_321, %c0_322], %578 {strides = array<i32>} : memref<8x32xf32, #tpu.memory_space<vmem>>, vector<8x32xf32>,
    %c7_i32_323 = arith.constant 7 : i32
    %581 = arith.index_cast %c7_i32_323 : i32 to index
    %c0_324 = arith.constant 0 : index
    %c0_325 = arith.constant 0 : index
    %582 = vector.load %arg8[%581, %c0_324, %c0_325] : memref<8x8x128xf32, #tpu.memory_space<vmem>>, vector<1x8x128xf32>
    %583 = vector.shape_cast %582 : vector<1x8x128xf32> to vector<8x128xf32>
    %c0_326 = arith.constant 0 : index
    %c0_327 = arith.constant 0 : index
    %584 = vector.load %arg10[%c0_326, %c0_327] : memref<8x32xf32, #tpu.memory_space<vmem>>, vector<8x32xf32>
    %585 = arith.truncf %584 : vector<8x32xf32> to vector<8x32xbf16>
    %cst_328 = arith.constant dense<0.000000e+00> : vector<8x128xf32>
    %586 = tpu.matmul %585, %285, %cst_328 {dimension_numbers = #tpu.dot_dimension_numbers<[1], [0], [0], [1], [0, 0, 1, 1], [], []>} : vector<8x32xbf16>, vector<32x128xbf16>, vector<8x128xf32> -> vector<8x128xf32>
    %587 = arith.addf %583, %586 : vector<8x128xf32>
    %588 = math.tanh %587 : vector<8x128xf32>
    %589 = vector.extract_strided_slice %588 {offsets = [0, 32], sizes = [8, 32], strides = [1, 1]} : vector<8x128xf32> to vector<8x32xf32>
    %cst_329 = arith.constant 5.000000e-01 : f32
    %590 = vector.broadcast %cst_329 : f32 to vector<8x32xf32>
    %591 = arith.mulf %590, %589 : vector<8x32xf32>
    %cst_330 = arith.constant 5.000000e-01 : f32
    %592 = vector.broadcast %cst_330 : f32 to vector<8x32xf32>
    %593 = arith.addf %591, %592 : vector<8x32xf32>
    %c0_331 = arith.constant 0 : index
    %c0_332 = arith.constant 0 : index
    %594 = vector.load %arg11[%c0_331, %c0_332] : memref<8x32xf32, #tpu.memory_space<vmem>>, vector<8x32xf32>
    %595 = arith.mulf %593, %594 : vector<8x32xf32>
    %596 = vector.extract_strided_slice %588 {offsets = [0, 0], sizes = [8, 32], strides = [1, 1]} : vector<8x128xf32> to vector<8x32xf32>
    %cst_333 = arith.constant 5.000000e-01 : f32
    %597 = vector.broadcast %cst_333 : f32 to vector<8x32xf32>
    %598 = arith.mulf %597, %596 : vector<8x32xf32>
    %cst_334 = arith.constant 5.000000e-01 : f32
    %599 = vector.broadcast %cst_334 : f32 to vector<8x32xf32>
    %600 = arith.addf %598, %599 : vector<8x32xf32>
    %601 = vector.extract_strided_slice %588 {offsets = [0, 64], sizes = [8, 32], strides = [1, 1]} : vector<8x128xf32> to vector<8x32xf32>
    %602 = arith.mulf %600, %601 : vector<8x32xf32>
    %603 = arith.addf %595, %602 : vector<8x32xf32>
    %604 = vector.extract_strided_slice %588 {offsets = [0, 96], sizes = [8, 32], strides = [1, 1]} : vector<8x128xf32> to vector<8x32xf32>
    %cst_335 = arith.constant 5.000000e-01 : f32
    %605 = vector.broadcast %cst_335 : f32 to vector<8x32xf32>
    %606 = arith.mulf %605, %604 : vector<8x32xf32>
    %cst_336 = arith.constant 5.000000e-01 : f32
    %607 = vector.broadcast %cst_336 : f32 to vector<8x32xf32>
    %608 = arith.addf %606, %607 : vector<8x32xf32>
    %609 = math.tanh %603 : vector<8x32xf32>
    %610 = arith.mulf %608, %609 : vector<8x32xf32>
    %c0_337 = arith.constant 0 : index
    %c0_338 = arith.constant 0 : index
    %611 = vector.load %arg11[%c0_337, %c0_338] : memref<8x32xf32, #tpu.memory_space<vmem>>, vector<8x32xf32>
    tpu.vector_store %arg11[%c0_337, %c0_338], %603 {strides = array<i32>} : memref<8x32xf32, #tpu.memory_space<vmem>>, vector<8x32xf32>,
    %c0_339 = arith.constant 0 : index
    %c0_340 = arith.constant 0 : index
    %612 = vector.load %arg10[%c0_339, %c0_340] : memref<8x32xf32, #tpu.memory_space<vmem>>, vector<8x32xf32>
    tpu.vector_store %arg10[%c0_339, %c0_340], %610 {strides = array<i32>} : memref<8x32xf32, #tpu.memory_space<vmem>>, vector<8x32xf32>,
    %c7_i32_341 = arith.constant 7 : i32
    %c0_342 = arith.constant 0 : index
    %c0_343 = arith.constant 0 : index
    %613 = vector.load %arg10[%c0_342, %c0_343] : memref<8x32xf32, #tpu.memory_space<vmem>>, vector<8x32xf32>
    %614 = arith.truncf %613 : vector<8x32xf32> to vector<8x32xbf16>
    %c0_344 = arith.constant 0 : index
    %c0_345 = arith.constant 0 : index
    %615 = vector.load %arg5[%c0_344, %c0_345] : memref<32x8xbf16, #tpu.memory_space<vmem>>, vector<32x8xbf16>
    %cst_346 = arith.constant dense<0.000000e+00> : vector<8x8xf32>
    %616 = tpu.matmul %614, %615, %cst_346 {dimension_numbers = #tpu.dot_dimension_numbers<[1], [0], [0], [1], [0, 0, 1, 1], [], []>} : vector<8x32xbf16>, vector<32x8xbf16>, vector<8x8xf32> -> vector<8x8xf32>
    %c0_347 = arith.constant 0 : index
    %c0_348 = arith.constant 0 : index
    %617 = vector.load %arg6[%c0_347, %c0_348] : memref<1x8xf32, #tpu.memory_space<vmem>>, vector<1x8xf32>
    %618 = vector.broadcast %617 : vector<1x8xf32> to vector<8x8xf32>
    %619 = arith.addf %616, %618 : vector<8x8xf32>
    %c0_349 = arith.constant 0 : index
    %c0_350 = arith.constant 0 : index
    %620 = vector.load %arg7[%c0_349, %c0_350] : memref<8x8xf32, #tpu.memory_space<vmem>>, vector<8x8xf32>
    tpu.vector_store %arg7[%c0_349, %c0_350], %619 {strides = array<i32>} : memref<8x8xf32, #tpu.memory_space<vmem>>, vector<8x8xf32>,
    return
  }
  func.func @transform_0(%arg0: i32) -> (i32, i32, i32) {
    %c0_i32 = arith.constant 0 : i32
    %c0_i32_0 = arith.constant 0 : i32
    %c0_i32_1 = arith.constant 0 : i32
    return %c0_i32, %arg0, %c0_i32_0 : i32, i32, i32
  }
  func.func @transform_1(%arg0: i32) -> (i32, i32, i32) {
    %c0_i32 = arith.constant 0 : i32
    %c0_i32_0 = arith.constant 0 : i32
    %c0_i32_1 = arith.constant 0 : i32
    %c0_i32_2 = arith.constant 0 : i32
    return %c0_i32, %c0_i32_0, %c0_i32_1 : i32, i32, i32
  }
  func.func @transform_2(%arg0: i32) -> (i32, i32, i32) {
    %c0_i32 = arith.constant 0 : i32
    %c0_i32_0 = arith.constant 0 : i32
    %c0_i32_1 = arith.constant 0 : i32
    %c0_i32_2 = arith.constant 0 : i32
    return %c0_i32, %c0_i32_0, %c0_i32_1 : i32, i32, i32
  }
  func.func @transform_3(%arg0: i32) -> (i32, i32, i32) {
    %c0_i32 = arith.constant 0 : i32
    %c0_i32_0 = arith.constant 0 : i32
    %c0_i32_1 = arith.constant 0 : i32
    %c0_i32_2 = arith.constant 0 : i32
    return %c0_i32, %c0_i32_0, %c0_i32_1 : i32, i32, i32
  }
  func.func @transform_4(%arg0: i32) -> (i32, i32) {
    %c0_i32 = arith.constant 0 : i32
    %c0_i32_0 = arith.constant 0 : i32
    %c0_i32_1 = arith.constant 0 : i32
    return %c0_i32, %c0_i32_0 : i32, i32
  }
  func.func @transform_5(%arg0: i32) -> (i32, i32) {
    %c0_i32 = arith.constant 0 : i32
    %c0_i32_0 = arith.constant 0 : i32
    %c0_i32_1 = arith.constant 0 : i32
    return %c0_i32, %c0_i32_0 : i32, i32
  }
  func.func @transform_6(%arg0: i32) -> (i32, i32) {
    %c0_i32 = arith.constant 0 : i32
    %c0_i32_0 = arith.constant 0 : i32
    return %arg0, %c0_i32 : i32, i32
  }
}

</mosaic_0001>

<bundles_post_ra>
// kernel: tpu_custom_call.1
= control target key start
LH: loop header
LB: loop body
LE: loop exit
PB: predicated region body
PF: predicated region fallthrough
CT: control target
= control target key end

     0   :  { %11 = vsyncpa [#allocation7], 0  ;;  %s2732_s0 = inlined_call_operand.hbm [shape: f32[8,8,128], index: 0, kind: input, shape index: {}]   ;;  %s2733_s1 = inlined_call_operand.vmem [shape: bf16[1,32,128], index: 1, kind: input, shape index: {}]   ;;  %s2734_s2 = inlined_call_operand.hbm [shape: bf16[2,32,128], index: 2, kind: input, shape index: {}]   ;;  %s2735_s3 = inlined_call_operand.vmem [shape: f32[1,1,128], index: 3, kind: input, shape index: {}]   ;;  %s2736_s4 = inlined_call_operand.vmem [shape: bf16[32,8], index: 4, kind: input, shape index: {}]   ;;  %s2737_s5 = inlined_call_operand.vmem [shape: f32[1,8], index: 5, kind: input, shape index: {}]   ;;  %s2738_s6 = inlined_call_operand.hbm [shape: f32[8,8], index: 6, kind: output, shape index: {}]  }
   0x1   :  { %12 = vsyncpa [#allocation10], 0 }
   0x2   :  { %13 = vsyncpa [#allocation8], 0  ;;  %s2283_s21 = smov [#allocation6]  }
   0x3   :  { %s19_s22 = sshll.u32 %s2283_s21, 4  ;;  %s20_s22 = int_to_ptr.vmem [resolvable:$true] %s19_s22 }
   0x4   :  { %s2225_s23 = scalar_lea.vmem %s20_s22, 1024  ;;  %p2230_p1 = scmp.lt.s32.totalorder %s20_s22, %s20_s22 }
   0x5   :  { %p2226_p0 = scmp.ne.s32.totalorder %s20_s22, %s2225_s23  ;;  %p2231_p2 = scmp.lt.s32.totalorder %s2225_s23, %s2225_s23 }
   0x7   :  { %p2232_p3 = por %p2231_p2, %p2230_p1 }
   0x9   :  { %p2233_p4 = pnand %p2232_p3, %p2226_p0 }
   0xb   :  { %2236 = shalt.err (!%p2233_p4)
}
   0xc   :  { %s2284_s24 = smov 128   ;;  %s2285_s25 = smov 8  }
   0xd   :  { %25 = dma.hbm_to_vmem [thread:$0]  %s2732_s0, 1024, %s20_s22, [#allocation7], %s2284_s24, %s2284_s24, %s2285_s25  }
   0xe   :  { %s2286_s28 = smov [#allocation9]  }
   0xf   :  { %s33_s29 = sshll.u32 %s2286_s28, 4  ;;  %s34_s29 = int_to_ptr.vmem [resolvable:$true] %s33_s29 }
  0x10   :  { %s2245_s30 = scalar_lea.vmem %s34_s29, 512  ;;  %p2250_p6 = scmp.lt.s32.totalorder %s34_s29, %s34_s29 }
  0x11   :  { %p2246_p5 = scmp.ne.s32.totalorder %s34_s29, %s2245_s30  ;;  %p2251_p7 = scmp.lt.s32.totalorder %s2245_s30, %s2245_s30 }
  0x13   :  { %p2252_p8 = por %p2251_p7, %p2250_p6 }
  0x15   :  { %p2253_p9 = pnand %p2252_p8, %p2246_p5 }
  0x17   :  { %2256 = shalt.err (!%p2253_p9)
}
  0x18   :  { %s2287_s7 = smov 64   ;;  %s2288_s8 = smov 4  }
  0x19   :  { %39 = dma.hbm_to_vmem [thread:$0]  %s2734_s2, 512, %s34_s29, [#allocation10], %s2287_s7, %s2287_s7, %s2288_s8  }
  0x1a   :  { %2277 = dma.done.wait [#allocation7], 1024  }
  0x1b   :  { %2278 = vsyncadd [#allocation7], 4294966272 }
  0x1c   :  { %2279 = dma.done.wait [#allocation10], 512  }
  0x1d   :  { %2280 = vsyncadd [#allocation10], 4294966784  ;;  %v57_v0 = vld [vmem:[#allocation6] sm:$0xff]  ;;  %vm72_vm0 = vcmask 261120   ;;  %s2289_s0 = smov 96   ;;  %s2290_s2 = smov 32  }
  0x1e   :  { %2153 = vtanh.f32 %v57_v0  ;;  %v2341_v8 = vld [vmem:[#allocation9 + $0x8] sm:$0xff]   ;;  %v2291_v9 = vmov 0.0   ;;  %vm2292_vm1 = vmmov 0   ;;  %v2347_v10 = vld [vmem:[#allocation9] sm:$0xff]   ;;  %v193_v39 = vld [vmem:[#allocation6 + $0x10] sm:$0xff]  ;;  %vm86_vm2 = vcmask 257024  }
  0x1f   :  { %1950 = vmatprep.subr.bf16.mxu0 %v2291_v9  ;;  %1954 = vmatprep.mubr.msk.bf16.mxu0 %vm2292_vm1, %v2291_v9  ;;  %v89_v16 = vld [vmem:[#allocation6 + $0x8] sm:$0xff]  ;;  %v285_v62 = vld [vmem:[#allocation6 + $0x18] sm:$0xff]  ;;  %vm1814_vm3 = vcmask 64512  }
  0x20   :  { %1951 = vmatpush3.bf16.msra.mxu0 %v2341_v8  ;;  %1958 = vmatprep.subr.bf16.mxu1 %v2291_v9 }
  0x21   :  { %1952 = vmatprep.subr.bf16.mxu0 %v2291_v9  ;;  %1959 = vmatpush3.bf16.msra.mxu1 %v2341_v8 }
  0x22   :  { %1960 = vmatprep.subr.bf16.mxu1 %v2291_v9  ;;  %1962 = vmatprep.mubr.msk.bf16.mxu1 %vm2292_vm1, %v2291_v9 }
  0x24   :  { %1953 = vmatpush3.bf16.msra.mxu0 %v2347_v10 }
  0x25   :  { %1961 = vmatpush3.bf16.msra.mxu1 %v2347_v10  ;;  %1966 = vmatprep.subr.bf16.mxu0 %v2291_v9 }
  0x26   :  { %1974 = vmatprep.subr.bf16.mxu1 %v2291_v9 }
  0x2b   :  { %v2154_v1 = vpop.eup %2153 }
  0x2c   :  { %62 = vrot.lane.b32.xlu0 %v2154_v1, %s2287_s7  ;;  %v59_v2 = vmul.f32 0.5, %v2154_v1 }
  0x2e   :  { %v60_v3 = vadd.f32 0.5, %v59_v2 }
  0x9e   :  { %v63_v4 = vpop.permute.xlu0 %62 }
  0x9f   :  { %v65_v5 = vmul.f32 %v63_v4, %v60_v3 }
  0xa1   :  { %2155 = vtanh.f32 %v65_v5  ;;  %73 = vst.msk [vmem:[#allocation5] sm:$0xff] %vm72_vm0, %v65_v5 }
  0xa8   :  { %v151_v7 = vld [vmem:[#allocation5] sm:$0xff] }
  0xae   :  { %v2156_v6 = vpop.eup %2155 }
  0xaf   :  { %68 = vrot.lane.b32.xlu0 %v2156_v6, %s2289_s0 }
  0xb3   :  { %153 = vrot.lane.b32.xlu0 %v151_v7, %s2290_s2 }
 0x121   :  { %v69_v11 = vpop.permute.xlu0 %68 }
 0x122   :  { %v2359_v12 = vmul.f32 %v69_v11, %v60_v3 }
 0x124   :  { %75 = vrot.lane.b32.xlu1 %v2359_v12, %s2290_s2 }
 0x125   :  { %v154_v27 = vpop.permute.xlu0 %153 }
 0x196   :  { %v76_v13 = vpop.permute.xlu1 %75 }
 0x197   :  { %78 = vst.msk [vmem:[#allocation4] sm:$0xff] %vm72_vm0, %v76_v13 }
 0x19e   :  { %v90_v14 = vld [vmem:[#allocation4] sm:$0xff] }
 0x19f   :  { %v91_v15 = vpack.c.bf16 %v90_v14, %v90_v14 }
 0x1a1   :  { %1955 = vmatmul.mubr.msk.bf16.vlgmr.msra.gmra.mxu0 %vm72_vm0, %v91_v15 }
 0x1a2   :  { %1967 = vmatpush3.bf16.msra.mxu0 %v2341_v8  ;;  %1970 = vmatprep.mubr.msk.bf16.mxu0 %vm2292_vm1, %v2291_v9 }
 0x1a3   :  { %1968 = vmatprep.subr.bf16.mxu0 %v2291_v9 }
 0x1a6   :  { %1969 = vmatpush3.bf16.msra.mxu0 %v2347_v10 }
 0x1a7   :  { %1982 = vmatprep.subr.bf16.mxu0 %v2291_v9 }
 0x261   :  { %v141_v17 = vpop.f32.mrf.mxu0 }
 0x262   :  { %v147_v18 = vadd.f32 %v141_v17, %v89_v16 }
 0x263   :  { %v1956_v19 = vpop.f32.mrf.mxu0 }
 0x264   :  { %2157 = vtanh.f32 %v147_v18 }
 0x265   :  { %v144_v20 = vpop.f32.mrf.mxu0 }
 0x267   :  { %v1957_v21 = vpop.f32.mrf.mxu0 }
 0x271   :  { %v2158_v22 = vpop.eup %2157 }
 0x272   :  { %158 = vrot.lane.b32.xlu1 %v2158_v22, %s2287_s7  ;;  %v149_v23 = vmul.f32 0.5, %v2158_v22 }
 0x274   :  { %v150_v24 = vadd.f32 0.5, %v149_v23 }
 0x276   :  { %v156_v28 = vmul.f32 %v154_v27, %v150_v24 }
 0x2e4   :  { %v159_v25 = vpop.permute.xlu1 %158 }
 0x2e5   :  { %v161_v26 = vmul.f32 %v159_v25, %v150_v24  ;;  %v377_v25 = vld [vmem:[#allocation6 + $0x20] sm:$0xff] }
 0x2e7   :  { %163 = vrot.lane.b32.xlu1 %v161_v26, %s2290_s2 }
 0x359   :  { %v164_v29 = vpop.permute.xlu1 %163 }
 0x35a   :  { %v166_v30 = vadd.f32 %v164_v29, %v156_v28 }
 0x35c   :  { %2159 = vtanh.f32 %v166_v30 }
 0x369   :  { %v2160_v31 = vpop.eup %2159 }
 0x36a   :  { %169 = vrot.lane.b32.xlu0 %v2160_v31, %s2287_s7 }
 0x36e   :  { %174 = vrot.lane.b32.xlu0 %v166_v30, %s2289_s0 }
 0x3dc   :  { %v170_v32 = vpop.permute.xlu0 %169 }
 0x3dd   :  { %v2375_v33 = vmul.f32 %v170_v32, %v150_v24 }
 0x3df   :  { %179 = vrot.lane.b32.xlu1 %v2375_v33, %s2290_s2 }
 0x3e0   :  { %v175_v34 = vpop.permute.xlu0 %174 }
 0x3e1   :  { %177 = vst.msk [vmem:[#allocation5] sm:$0xff] %vm72_vm0, %v175_v34 }
 0x3e8   :  { %v243_v35 = vld [vmem:[#allocation5] sm:$0xff] }
 0x3e9   :  { %245 = vrot.lane.b32.xlu0 %v243_v35, %s2290_s2 }
 0x451   :  { %v180_v36 = vpop.permute.xlu1 %179 }
 0x452   :  { %182 = vst.msk [vmem:[#allocation4] sm:$0xff] %vm72_vm0, %v180_v36 }
 0x459   :  { %v194_v37 = vld [vmem:[#allocation4] sm:$0xff] }
 0x45a   :  { %v195_v38 = vpack.c.bf16 %v194_v37, %v194_v37 }
 0x45b   :  { %v246_v50 = vpop.permute.xlu0 %245 }
 0x45c   :  { %1963 = vmatmul.mubr.msk.bf16.vlgmr.msra.gmra.mxu1 %vm72_vm0, %v195_v38 }
 0x45d   :  { %1975 = vmatpush3.bf16.msra.mxu1 %v2341_v8  ;;  %1978 = vmatprep.mubr.msk.bf16.mxu1 %vm2292_vm1, %v2291_v9 }
 0x45e   :  { %1976 = vmatprep.subr.bf16.mxu1 %v2291_v9 }
 0x461   :  { %1977 = vmatpush3.bf16.msra.mxu1 %v2347_v10 }
 0x462   :  { %1990 = vmatprep.subr.bf16.mxu1 %v2291_v9 }
 0x51c   :  { %v233_v40 = vpop.f32.mrf.mxu1 }
 0x51d   :  { %v239_v41 = vadd.f32 %v233_v40, %v193_v39 }
 0x51e   :  { %v1964_v42 = vpop.f32.mrf.mxu1 }
 0x51f   :  { %2161 = vtanh.f32 %v239_v41 }
 0x520   :  { %v236_v43 = vpop.f32.mrf.mxu1 }
 0x522   :  { %v1965_v44 = vpop.f32.mrf.mxu1 }
 0x52c   :  { %v2162_v45 = vpop.eup %2161 }
 0x52d   :  { %250 = vrot.lane.b32.xlu1 %v2162_v45, %s2287_s7  ;;  %v241_v46 = vmul.f32 0.5, %v2162_v45 }
 0x52f   :  { %v242_v47 = vadd.f32 0.5, %v241_v46 }
 0x531   :  { %v248_v51 = vmul.f32 %v246_v50, %v242_v47 }
 0x59f   :  { %v251_v48 = vpop.permute.xlu1 %250 }
 0x5a0   :  { %v253_v49 = vmul.f32 %v251_v48, %v242_v47 }
 0x5a2   :  { %255 = vrot.lane.b32.xlu1 %v253_v49, %s2290_s2  ;;  %v469_v49 = vld [vmem:[#allocation6 + $0x28] sm:$0xff] }
 0x614   :  { %v256_v52 = vpop.permute.xlu1 %255 }
 0x615   :  { %v258_v53 = vadd.f32 %v256_v52, %v248_v51 }
 0x617   :  { %2163 = vtanh.f32 %v258_v53 }
 0x624   :  { %v2164_v54 = vpop.eup %2163 }
 0x625   :  { %261 = vrot.lane.b32.xlu0 %v2164_v54, %s2287_s7 }
 0x629   :  { %266 = vrot.lane.b32.xlu0 %v258_v53, %s2289_s0 }
 0x697   :  { %v262_v55 = vpop.permute.xlu0 %261 }
 0x698   :  { %v2393_v56 = vmul.f32 %v262_v55, %v242_v47 }
 0x69a   :  { %271 = vrot.lane.b32.xlu1 %v2393_v56, %s2290_s2 }
 0x69b   :  { %v267_v57 = vpop.permute.xlu0 %266 }
 0x69c   :  { %269 = vst.msk [vmem:[#allocation5] sm:$0xff] %vm72_vm0, %v267_v57 }
 0x6a3   :  { %v335_v58 = vld [vmem:[#allocation5] sm:$0xff] }
 0x6a4   :  { %337 = vrot.lane.b32.xlu0 %v335_v58, %s2290_s2 }
 0x70c   :  { %v272_v59 = vpop.permute.xlu1 %271 }
 0x70d   :  { %274 = vst.msk [vmem:[#allocation4] sm:$0xff] %vm72_vm0, %v272_v59 }
 0x714   :  { %v286_v60 = vld [vmem:[#allocation4] sm:$0xff] }
 0x715   :  { %v287_v61 = vpack.c.bf16 %v286_v60, %v286_v60 }
 0x716   :  { %v338_v13 = vpop.permute.xlu0 %337 }
 0x717   :  { %1971 = vmatmul.mubr.msk.bf16.vlgmr.msra.gmra.mxu0 %vm72_vm0, %v287_v61 }
 0x718   :  { %1983 = vmatpush3.bf16.msra.mxu0 %v2341_v8  ;;  %1986 = vmatprep.mubr.msk.bf16.mxu0 %vm2292_vm1, %v2291_v9 }
 0x719   :  { %1984 = vmatprep.subr.bf16.mxu0 %v2291_v9 }
 0x71c   :  { %1985 = vmatpush3.bf16.msra.mxu0 %v2347_v10 }
 0x71d   :  { %1998 = vmatprep.subr.bf16.mxu0 %v2291_v9 }
 0x7d7   :  { %v325_v63 = vpop.f32.mrf.mxu0 }
 0x7d8   :  { %v331_v0 = vadd.f32 %v325_v63, %v285_v62 }
 0x7d9   :  { %v1972_v1 = vpop.f32.mrf.mxu0 }
 0x7da   :  { %2165 = vtanh.f32 %v331_v0 }
 0x7db   :  { %v328_v2 = vpop.f32.mrf.mxu0 }
 0x7dd   :  { %v1973_v3 = vpop.f32.mrf.mxu0 }
 0x7e7   :  { %v2166_v4 = vpop.eup %2165 }
 0x7e8   :  { %342 = vrot.lane.b32.xlu1 %v2166_v4, %s2287_s7  ;;  %v333_v5 = vmul.f32 0.5, %v2166_v4 }
 0x7ea   :  { %v334_v6 = vadd.f32 0.5, %v333_v5 }
 0x7ec   :  { %v340_v14 = vmul.f32 %v338_v13, %v334_v6 }
 0x85a   :  { %v343_v7 = vpop.permute.xlu1 %342 }
 0x85b   :  { %v345_v11 = vmul.f32 %v343_v7, %v334_v6  ;;  %v561_v7 = vld [vmem:[#allocation6 + $0x30] sm:$0xff] }
 0x85d   :  { %347 = vrot.lane.b32.xlu1 %v345_v11, %s2290_s2 }
 0x8cf   :  { %v348_v15 = vpop.permute.xlu1 %347 }
 0x8d0   :  { %v350_v16 = vadd.f32 %v348_v15, %v340_v14 }
 0x8d2   :  { %2167 = vtanh.f32 %v350_v16 }
 0x8df   :  { %v2168_v17 = vpop.eup %2167 }
 0x8e0   :  { %353 = vrot.lane.b32.xlu0 %v2168_v17, %s2287_s7 }
 0x8e4   :  { %358 = vrot.lane.b32.xlu0 %v350_v16, %s2289_s0 }
 0x952   :  { %v354_v18 = vpop.permute.xlu0 %353 }
 0x953   :  { %v2411_v19 = vmul.f32 %v354_v18, %v334_v6 }
 0x955   :  { %363 = vrot.lane.b32.xlu1 %v2411_v19, %s2290_s2 }
 0x956   :  { %v359_v20 = vpop.permute.xlu0 %358 }
 0x957   :  { %361 = vst.msk [vmem:[#allocation5] sm:$0xff] %vm72_vm0, %v359_v20 }
 0x95e   :  { %v427_v21 = vld [vmem:[#allocation5] sm:$0xff] }
 0x95f   :  { %429 = vrot.lane.b32.xlu0 %v427_v21, %s2290_s2 }
 0x9c7   :  { %v364_v22 = vpop.permute.xlu1 %363 }
 0x9c8   :  { %366 = vst.msk [vmem:[#allocation4] sm:$0xff] %vm72_vm0, %v364_v22 }
 0x9cf   :  { %v378_v23 = vld [vmem:[#allocation4] sm:$0xff] }
 0x9d0   :  { %v379_v24 = vpack.c.bf16 %v378_v23, %v378_v23 }
 0x9d1   :  { %v430_v37 = vpop.permute.xlu0 %429 }
 0x9d2   :  { %1979 = vmatmul.mubr.msk.bf16.vlgmr.msra.gmra.mxu1 %vm72_vm0, %v379_v24 }
 0x9d3   :  { %1991 = vmatpush3.bf16.msra.mxu1 %v2341_v8  ;;  %1994 = vmatprep.mubr.msk.bf16.mxu1 %vm2292_vm1, %v2291_v9 }
 0x9d4   :  { %1992 = vmatprep.subr.bf16.mxu1 %v2291_v9 }
 0x9d7   :  { %1993 = vmatpush3.bf16.msra.mxu1 %v2347_v10 }
 0x9d8   :  { %2006 = vmatprep.subr.bf16.mxu1 %v2291_v9 }
 0xa92   :  { %v417_v26 = vpop.f32.mrf.mxu1 }
 0xa93   :  { %v423_v27 = vadd.f32 %v417_v26, %v377_v25 }
 0xa94   :  { %v1980_v28 = vpop.f32.mrf.mxu1 }
 0xa95   :  { %2169 = vtanh.f32 %v423_v27  ;;  %v2462_v27 = vld [vmem:[%s2733_s1 + $0x8] sm:$0xff]   ;;  %v2469_v28 = vld [vmem:[%s2733_s1] sm:$0xff]  }
 0xa96   :  { %v420_v29 = vpop.f32.mrf.mxu1 }
 0xa98   :  { %v1981_v30 = vpop.f32.mrf.mxu1 }
 0xa99   :  { %v1873_v30 = vpack.c.bf16 %v2359_v12, %v2359_v12 }
 0xaa2   :  { %v2170_v31 = vpop.eup %2169 }
 0xaa3   :  { %434 = vrot.lane.b32.xlu1 %v2170_v31, %s2287_s7  ;;  %v425_v32 = vmul.f32 0.5, %v2170_v31 }
 0xaa5   :  { %v426_v34 = vadd.f32 0.5, %v425_v32 }
 0xaa7   :  { %v432_v38 = vmul.f32 %v430_v37, %v426_v34 }
 0xb15   :  { %v435_v35 = vpop.permute.xlu1 %434 }
 0xb16   :  { %v437_v36 = vmul.f32 %v435_v35, %v426_v34 }
 0xb18   :  { %439 = vrot.lane.b32.xlu1 %v437_v36, %s2290_s2 }
 0xb8a   :  { %v440_v39 = vpop.permute.xlu1 %439 }
 0xb8b   :  { %v442_v40 = vadd.f32 %v440_v39, %v432_v38 }
 0xb8d   :  { %2171 = vtanh.f32 %v442_v40 }
 0xb9a   :  { %v2172_v41 = vpop.eup %2171 }
 0xb9b   :  { %445 = vrot.lane.b32.xlu0 %v2172_v41, %s2287_s7 }
 0xb9f   :  { %450 = vrot.lane.b32.xlu0 %v442_v40, %s2289_s0  ;;  %v2503_v40 = vld [vmem:[%s2735_s3] ss:$0 sm:$0xff] }
 0xc0d   :  { %v446_v42 = vpop.permute.xlu0 %445 }
 0xc0e   :  { %v2429_v43 = vmul.f32 %v446_v42, %v426_v34 }
 0xc10   :  { %455 = vrot.lane.b32.xlu1 %v2429_v43, %s2290_s2 }
 0xc11   :  { %v451_v44 = vpop.permute.xlu0 %450 }
 0xc12   :  { %453 = vst.msk [vmem:[#allocation5] sm:$0xff] %vm72_vm0, %v451_v44 }
 0xc19   :  { %v519_v45 = vld [vmem:[#allocation5] sm:$0xff] }
 0xc1a   :  { %521 = vrot.lane.b32.xlu0 %v519_v45, %s2290_s2 }
 0xc82   :  { %v456_v46 = vpop.permute.xlu1 %455 }
 0xc83   :  { %458 = vst.msk [vmem:[#allocation4] sm:$0xff] %vm72_vm0, %v456_v46 }
 0xc8a   :  { %v470_v47 = vld [vmem:[#allocation4] sm:$0xff] }
 0xc8b   :  { %v471_v48 = vpack.c.bf16 %v470_v47, %v470_v47 }
 0xc8c   :  { %v522_v60 = vpop.permute.xlu0 %521 }
 0xc8d   :  { %1987 = vmatmul.mubr.msk.bf16.vlgmr.msra.gmra.mxu0 %vm72_vm0, %v471_v48  ;;  %v653_v48 = vld [vmem:[#allocation6 + $0x38] sm:$0xff] }
 0xc8e   :  { %1999 = vmatpush3.bf16.msra.mxu0 %v2341_v8  ;;  %2002 = vmatprep.mubr.msk.bf16.mxu0 %vm2292_vm1, %v2291_v9 }
 0xc8f   :  { %2000 = vmatprep.subr.bf16.mxu0 %v2291_v9 }
 0xc92   :  { %2001 = vmatpush3.bf16.msra.mxu0 %v2347_v10 }
 0xc93   :  { %2014 = vmatprep.subr.bf16.mxu0 %v2291_v9 }
 0xd4d   :  { %v509_v50 = vpop.f32.mrf.mxu0 }
 0xd4e   :  { %v515_v51 = vadd.f32 %v509_v50, %v469_v49 }
 0xd4f   :  { %v1988_v52 = vpop.f32.mrf.mxu0 }
 0xd50   :  { %2173 = vtanh.f32 %v515_v51 }
 0xd51   :  { %v512_v53 = vpop.f32.mrf.mxu0 }
 0xd53   :  { %v1989_v54 = vpop.f32.mrf.mxu0 }
 0xd5d   :  { %v2174_v55 = vpop.eup %2173 }
 0xd5e   :  { %526 = vrot.lane.b32.xlu1 %v2174_v55, %s2287_s7  ;;  %v517_v8 = vmul.f32 0.5, %v2174_v55 }
 0xd60   :  { %v518_v57 = vadd.f32 0.5, %v517_v8 }
 0xd62   :  { %v524_v10 = vmul.f32 %v522_v60, %v518_v57 }
 0xdd0   :  { %v527_v58 = vpop.permute.xlu1 %526 }
 0xdd1   :  { %v529_v59 = vmul.f32 %v527_v58, %v518_v57 }
 0xdd3   :  { %531 = vrot.lane.b32.xlu1 %v529_v59, %s2290_s2 }
 0xe45   :  { %v532_v61 = vpop.permute.xlu1 %531 }
 0xe46   :  { %v534_v62 = vadd.f32 %v532_v61, %v524_v10  ;;  %v1877_v10 = vpack.c.bf16 %v2429_v43, %v2429_v43  ;;  %v1875_v43 = vpack.c.bf16 %v2393_v56, %v2393_v56 }
 0xe48   :  { %2175 = vtanh.f32 %v534_v62 }
 0xe55   :  { %v2176_v63 = vpop.eup %2175 }
 0xe56   :  { %537 = vrot.lane.b32.xlu0 %v2176_v63, %s2287_s7 }
 0xe5a   :  { %542 = vrot.lane.b32.xlu0 %v534_v62, %s2289_s0 }
 0xec8   :  { %v538_v0 = vpop.permute.xlu0 %537 }
 0xec9   :  { %v2447_v1 = vmul.f32 %v538_v0, %v518_v57 }
 0xecb   :  { %547 = vrot.lane.b32.xlu1 %v2447_v1, %s2290_s2 }
 0xecc   :  { %v543_v2 = vpop.permute.xlu0 %542 }
 0xecd   :  { %545 = vst.msk [vmem:[#allocation5] sm:$0xff] %vm72_vm0, %v543_v2 }
 0xed4   :  { %v611_v3 = vld [vmem:[#allocation5] sm:$0xff] }
 0xed5   :  { %613 = vrot.lane.b32.xlu0 %v611_v3, %s2290_s2 }
 0xf3d   :  { %v548_v4 = vpop.permute.xlu1 %547 }
 0xf3e   :  { %550 = vst.msk [vmem:[#allocation4] sm:$0xff] %vm72_vm0, %v548_v4 }
 0xf45   :  { %v562_v5 = vld [vmem:[#allocation4] sm:$0xff] }
 0xf46   :  { %v563_v6 = vpack.c.bf16 %v562_v5, %v562_v5 }
 0xf47   :  { %v614_v23 = vpop.permute.xlu0 %613 }
 0xf48   :  { %1995 = vmatmul.mubr.msk.bf16.vlgmr.msra.gmra.mxu1 %vm72_vm0, %v563_v6 }
 0xf49   :  { %2010 = vmatprep.mubr.msk.bf16.mxu1 %vm2292_vm1, %v2291_v9  ;;  %2007 = vmatpush3.bf16.msra.mxu1 %v2462_v27 }
 0xf4a   :  { %2008 = vmatprep.subr.bf16.mxu1 %v2291_v9 }
 0xf4d   :  { %2009 = vmatpush3.bf16.msra.mxu1 %v2469_v28 }
 0xf4e   :  { %2022 = vmatprep.subr.bf16.mxu1 %v2291_v9 }
0x1008   :  { %v601_v11 = vpop.f32.mrf.mxu1 }
0x1009   :  { %v607_v13 = vadd.f32 %v601_v11, %v561_v7 }
0x100a   :  { %v1996_v14 = vpop.f32.mrf.mxu1 }
0x100b   :  { %2177 = vtanh.f32 %v607_v13  ;;  %v1874_v13 = vpack.c.bf16 %v2375_v33, %v2375_v33 }
0x100c   :  { %v604_v15 = vpop.f32.mrf.mxu1 }
0x100e   :  { %v1997_v16 = vpop.f32.mrf.mxu1 }
0x1018   :  { %v2178_v17 = vpop.eup %2177 }
0x1019   :  { %618 = vrot.lane.b32.xlu1 %v2178_v17, %s2287_s7  ;;  %v609_v18 = vmul.f32 0.5, %v2178_v17 }
0x101b   :  { %v610_v20 = vadd.f32 0.5, %v609_v18 }
0x101d   :  { %v616_v24 = vmul.f32 %v614_v23, %v610_v20 }
0x108b   :  { %v619_v21 = vpop.permute.xlu1 %618 }
0x108c   :  { %v621_v22 = vmul.f32 %v619_v21, %v610_v20 }
0x108e   :  { %623 = vrot.lane.b32.xlu1 %v621_v22, %s2290_s2 }
0x1100   :  { %v624_v25 = vpop.permute.xlu1 %623 }
0x1101   :  { %v626_v26 = vadd.f32 %v624_v25, %v616_v24  ;;  %v2554_v24 = vld [vmem:[#allocation9 + $0x18] sm:$0xff]  }
0x1103   :  { %2179 = vtanh.f32 %v626_v26 }
0x1110   :  { %v2180_v29 = vpop.eup %2179 }
0x1111   :  { %629 = vrot.lane.b32.xlu0 %v2180_v29, %s2287_s7 }
0x1115   :  { %83 = vrot.lane.b32.xlu0 %v1873_v30, %s2290_s2 }
0x1183   :  { %v630_v31 = vpop.permute.xlu0 %629 }
0x1184   :  { %v2477_v32 = vmul.f32 %v630_v31, %v610_v20 }
0x1186   :  { %639 = vrot.lane.b32.xlu1 %v2477_v32, %s2290_s2  ;;  %v1879_v11 = vpack.c.bf16 %v2477_v32, %v2477_v32 }
0x1187   :  { %v84_v34 = vpop.permute.xlu0 %83 }
0x1188   :  { %87 = vst.msk [vmem:[#allocation3] sm:$0xf] %vm86_vm2, %v84_v34 }
0x118a   :  { %634 = vrot.lane.b32.xlu1 %v626_v26, %s2289_s0  ;;  %v2561_v26 = vld [vmem:[#allocation9 + $0x10] sm:$0xff]  }
0x118f   :  { %v754_v35 = vld [vmem:[#allocation3] sm:$0xf] }
0x1190   :  { %2011 = vmatmul.mubr.msk.bf16.vlgmr.msra.gmra.mxu1 %vm72_vm0, %v754_v35 }
0x1191   :  { %2023 = vmatpush3.bf16.msra.mxu1 %v2462_v27  ;;  %2026 = vmatprep.mubr.msk.bf16.mxu1 %vm2292_vm1, %v2291_v9 }
0x1192   :  { %2024 = vmatprep.subr.bf16.mxu1 %v2291_v9 }
0x1195   :  { %2025 = vmatpush3.bf16.msra.mxu1 %v2469_v28 }
0x1196   :  { %2038 = vmatprep.subr.bf16.mxu1 %v2291_v9 }
0x11f8   :  { %v640_v12 = vpop.permute.xlu1 %639 }
0x11f9   :  { %642 = vst.msk [vmem:[#allocation4] sm:$0xff] %vm72_vm0, %v640_v12 }
0x11fc   :  { %v635_v36 = vpop.permute.xlu1 %634 }
0x11fd   :  { %637 = vst.msk [vmem:[#allocation5] sm:$0xff] %vm72_vm0, %v635_v36 }
0x1200   :  { %v654_v37 = vld [vmem:[#allocation4] sm:$0xff] }
0x1201   :  { %v655_v38 = vpack.c.bf16 %v654_v37, %v654_v37 }
0x1203   :  { %2003 = vmatmul.mubr.msk.bf16.vlgmr.msra.gmra.mxu0 %vm72_vm0, %v655_v38 }
0x1204   :  { %v703_v39 = vld [vmem:[#allocation5] sm:$0xff]  ;;  %2015 = vmatpush3.bf16.msra.mxu0 %v2462_v27  ;;  %2018 = vmatprep.mubr.msk.bf16.mxu0 %vm2292_vm1, %v2291_v9 }
0x1205   :  { %705 = vrot.lane.b32.xlu1 %v703_v39, %s2290_s2  ;;  %2016 = vmatprep.subr.bf16.mxu0 %v2291_v9 }
0x1208   :  { %2017 = vmatpush3.bf16.msra.mxu0 %v2469_v28 }
0x1209   :  { %2030 = vmatprep.subr.bf16.mxu0 %v2291_v9 }
0x1250   :  { %v810_v41 = vpop.f32.mrf.mxu1 }
0x1251   :  { %v811_v42 = vadd.f32 %v2503_v40, %v810_v41 }
0x1252   :  { %v2012_v44 = vpop.f32.mrf.mxu1 }
0x1253   :  { %2181 = vtanh.f32 %v811_v42 }
0x1254   :  { %v813_v45 = vpop.f32.mrf.mxu1 }
0x1256   :  { %v2013_v46 = vpop.f32.mrf.mxu1 }
0x1260   :  { %v2182_v47 = vpop.eup %2181 }
0x1261   :  { %1144 = vrot.lane.b32.xlu1 %v2182_v47, %s2287_s7  ;;  %v1141_v54 = vmul.f32 0.5, %v2182_v47 }
0x1263   :  { %v1142_v8 = vadd.f32 0.5, %v1141_v54 }
0x1277   :  { %v706_v55 = vpop.permute.xlu1 %705 }
0x12c3   :  { %v693_v49 = vpop.f32.mrf.mxu0 }
0x12c4   :  { %v699_v50 = vadd.f32 %v693_v49, %v653_v48 }
0x12c5   :  { %v2004_v51 = vpop.f32.mrf.mxu0 }
0x12c6   :  { %2183 = vtanh.f32 %v699_v50 }
0x12c7   :  { %v696_v52 = vpop.f32.mrf.mxu0 }
0x12c9   :  { %v2005_v53 = vpop.f32.mrf.mxu0 }
0x12d3   :  { %v2184_v57 = vpop.eup %2183  ;;  %v1145_v58 = vpop.permute.xlu1 %1144 }
0x12d4   :  { %v1147_v59 = vmul.f32 %v1145_v58, %v1142_v8  ;;  %710 = vrot.lane.b32.xlu0 %v2184_v57, %s2287_s7  ;;  %v701_v61 = vmul.f32 0.5, %v2184_v57 }
0x12d6   :  { %2185 = vtanh.f32 %v1147_v59  ;;  %v702_v62 = vadd.f32 0.5, %v701_v61  ;;  %v1876_v61 = vpack.c.bf16 %v2411_v19, %v2411_v19 }
0x12d8   :  { %v708_v4 = vmul.f32 %v706_v55, %v702_v62 }
0x12e3   :  { %v2186_v60 = vpop.eup %2185 }
0x12e4   :  { %1150 = vrot.lane.b32.xlu1 %v2186_v60, %s2289_s0 }
0x12e8   :  { %463 = vrot.lane.b32.xlu1 %v1877_v10, %s2290_s2 }
0x1346   :  { %v711_v63 = vpop.permute.xlu0 %710 }
0x1347   :  { %v713_v0 = vmul.f32 %v711_v63, %v702_v62 }
0x1349   :  { %715 = vrot.lane.b32.xlu0 %v713_v0, %s2290_s2 }
0x1356   :  { %v1151_v2 = vpop.permute.xlu1 %1150 }
0x1357   :  { %v1153_v16 = vmul.f32 %v1151_v2, %v1142_v8 }
0x135a   :  { %v464_v3 = vpop.permute.xlu1 %463 }
0x135b   :  { %467 = vst.msk [vmem:[#allocation3 + $0x10] sm:$0xf] %vm86_vm2, %v464_v3 }
0x1362   :  { %v955_v22 = vld [vmem:[#allocation3 + $0x10] sm:$0xf] }
0x13bb   :  { %v716_v5 = vpop.permute.xlu0 %715 }
0x13bc   :  { %v718_v6 = vadd.f32 %v716_v5, %v708_v4 }
0x13be   :  { %2187 = vtanh.f32 %v718_v6 }
0x13cb   :  { %v2188_v7 = vpop.eup %2187 }
0x13cc   :  { %721 = vrot.lane.b32.xlu0 %v2188_v7, %s2287_s7  ;;  %v1878_v7 = vpack.c.bf16 %v2447_v1, %v2447_v1 }
0x13d0   :  { %279 = vrot.lane.b32.xlu0 %v1875_v43, %s2290_s2 }
0x13d4   :  { %647 = vrot.lane.b32.xlu0 %v1879_v11, %s2290_s2 }
0x13d8   :  { %187 = vrot.lane.b32.xlu0 %v1874_v13, %s2290_s2 }
0x13dc   :  { %726 = vrot.lane.b32.xlu0 %v718_v6, %s2289_s0 }
0x143e   :  { %v722_v14 = vpop.permute.xlu0 %721 }
0x143f   :  { %v2525_v15 = vmul.f32 %v722_v14, %v702_v62 }
0x1441   :  { %731 = vrot.lane.b32.xlu1 %v2525_v15, %s2290_s2  ;;  %v1880_v62 = vpack.c.bf16 %v2525_v15, %v2525_v15 }
0x1442   :  { %v280_v56 = vpop.permute.xlu0 %279 }
0x1443   :  { %283 = vst.msk [vmem:[#allocation3 + $0x8] sm:$0xf] %vm86_vm2, %v280_v56 }
0x1445   :  { %1156 = vrot.lane.b32.xlu1 %v1153_v16, %s2290_s2 }
0x1446   :  { %v648_v17 = vpop.permute.xlu0 %647 }
0x1447   :  { %651 = vst.msk [vmem:[#allocation3 + $0x18] sm:$0xf] %vm86_vm2, %v648_v17 }
0x144a   :  { %v188_v33 = vpop.permute.xlu0 %187  ;;  %v863_v18 = vld [vmem:[#allocation3 + $0x8] sm:$0xf] }
0x144b   :  { %191 = vst.msk [vmem:[#allocation3 + $0x4] sm:$0xf] %vm86_vm2, %v188_v33  ;;  %2027 = vmatmul.mubr.msk.bf16.vlgmr.msra.gmra.mxu1 %vm72_vm0, %v863_v18 }
0x144c   :  { %2039 = vmatpush3.bf16.msra.mxu1 %v2462_v27  ;;  %2042 = vmatprep.mubr.msk.bf16.mxu1 %vm2292_vm1, %v2291_v9 }
0x144d   :  { %2040 = vmatprep.subr.bf16.mxu1 %v2291_v9 }
0x144e   :  { %v727_v20 = vpop.permute.xlu0 %726  ;;  %v1047_v25 = vld [vmem:[#allocation3 + $0x18] sm:$0xf] }
0x144f   :  { %729 = vst.msk [vmem:[#allocation5] sm:$0xff] %vm72_vm0, %v727_v20 }
0x1450   :  { %1154 = vst.msk [vmem:[#allocation5] sm:$0xff] %vm72_vm0, %v1147_v59  ;;  %2041 = vmatpush3.bf16.msra.mxu1 %v2469_v28 }
0x1451   :  { %2054 = vmatprep.subr.bf16.mxu1 %v2291_v9 }
0x1452   :  { %v817_v21 = vld [vmem:[#allocation3 + $0x4] sm:$0xf] }
0x1453   :  { %2019 = vmatmul.mubr.msk.bf16.vlgmr.msra.gmra.mxu0 %vm72_vm0, %v817_v21  ;;  %2043 = vmatmul.mubr.msk.bf16.vlgmr.msra.gmra.mxu1 %vm72_vm0, %v955_v22 }
0x1454   :  { %2055 = vmatpush3.bf16.msra.mxu1 %v2462_v27  ;;  %2058 = vmatprep.mubr.msk.bf16.mxu1 %vm2292_vm1, %v2291_v9 }
0x1455   :  { %2056 = vmatprep.subr.bf16.mxu1 %v2291_v9  ;;  %2031 = vmatpush3.bf16.msra.mxu0 %v2462_v27 }
0x1456   :  { %2032 = vmatprep.subr.bf16.mxu0 %v2291_v9  ;;  %2034 = vmatprep.mubr.msk.bf16.mxu0 %vm2292_vm1, %v2291_v9 }
0x1457   :  { %v1222_v23 = vld [vmem:[#allocation5] sm:$0xff] }
0x1458   :  { %2057 = vmatpush3.bf16.msra.mxu1 %v2469_v28  ;;  %1224 = vrot.lane.b32.xlu0 %v1222_v23, %s2290_s2 }
0x1459   :  { %2070 = vmatprep.subr.bf16.mxu1 %v2291_v9  ;;  %2033 = vmatpush3.bf16.msra.mxu0 %v2469_v28 }
0x145a   :  { %2046 = vmatprep.subr.bf16.mxu0 %v2291_v9 }
0x145b   :  { %2059 = vmatmul.mubr.msk.bf16.vlgmr.msra.gmra.mxu1 %vm72_vm0, %v1047_v25 }
0x145c   :  { %2071 = vmatpush3.bf16.msra.mxu1 %v2554_v24  ;;  %2074 = vmatprep.mubr.msk.bf16.mxu1 %vm2292_vm1, %v2291_v9 }
0x145d   :  { %2072 = vmatprep.subr.bf16.mxu1 %v2291_v9 }
0x1460   :  { %2073 = vmatpush3.bf16.msra.mxu1 %v2561_v26 }
0x1461   :  { %2086 = vmatprep.subr.bf16.mxu1 %v2291_v9 }
0x14b3   :  { %v732_v29 = vpop.permute.xlu1 %731 }
0x14b4   :  { %734 = vst.msk [vmem:[#allocation4] sm:$0xff] %vm72_vm0, %v732_v29 }
0x14b7   :  { %v1157_v30 = vpop.permute.xlu1 %1156 }
0x14b8   :  { %1159 = vst.msk [vmem:[#allocation4] sm:$0xff] %vm72_vm0, %v1157_v30 }
0x14bf   :  { %v1161_v31 = vld [vmem:[#allocation4] sm:$0xff] }
0x14c0   :  { %v1162_v32 = vpack.c.bf16 %v1161_v31, %v1161_v31 }
0x14c2   :  { %2075 = vmatmul.mubr.msk.bf16.vlgmr.msra.gmra.mxu1 %vm72_vm0, %v1162_v32 }
0x14c3   :  { %2087 = vmatpush3.bf16.msra.mxu1 %v2554_v24  ;;  %2090 = vmatprep.mubr.msk.bf16.mxu1 %vm2292_vm1, %v2291_v9 }
0x14c4   :  { %2088 = vmatprep.subr.bf16.mxu1 %v2291_v9 }
0x14c7   :  { %2089 = vmatpush3.bf16.msra.mxu1 %v2561_v26 }
0x14c8   :  { %2102 = vmatprep.subr.bf16.mxu1 %v2291_v9 }
0x14ca   :  { %v1225_v63 = vpop.permute.xlu0 %1224 }
0x150b   :  { %v2577_v34 = vpop.f32.mrf.mxu1 }
0x150d   :  { %v2028_v35 = vpop.f32.mrf.mxu1 }
0x150e   :  { %v902_v35 = vadd.f32 %v2503_v40, %v2577_v34 }
0x150f   :  { %v904_v12 = vpop.f32.mrf.mxu1 }
0x1511   :  { %v2029_v36 = vpop.f32.mrf.mxu1 }
0x1513   :  { %v855_v37 = vpop.f32.mrf.mxu0  ;;  %v2579_v38 = vpop.f32.mrf.mxu1 }
0x1514   :  { %v856_v51 = vadd.f32 %v2503_v40, %v855_v37 }
0x1515   :  { %v2020_v39 = vpop.f32.mrf.mxu0  ;;  %v2044_v41 = vpop.f32.mrf.mxu1 }
0x1517   :  { %v858_v42 = vpop.f32.mrf.mxu0  ;;  %v996_v44 = vpop.f32.mrf.mxu1 }
0x1519   :  { %v2021_v45 = vpop.f32.mrf.mxu0  ;;  %v2045_v46 = vpop.f32.mrf.mxu1 }
0x151b   :  { %v2581_v47 = vpop.f32.mrf.mxu1 }
0x151d   :  { %v2060_v48 = vpop.f32.mrf.mxu1 }
0x151f   :  { %v1088_v49 = vpop.f32.mrf.mxu1 }
0x1521   :  { %v2061_v50 = vpop.f32.mrf.mxu1 }
0x1582   :  { %v1212_v52 = vpop.f32.mrf.mxu1 }
0x1583   :  { %v1218_v53 = vadd.f32 %v1212_v52, %v856_v51 }
0x1584   :  { %v2076_v54 = vpop.f32.mrf.mxu1 }
0x1585   :  { %2189 = vtanh.f32 %v1218_v53 }
0x1586   :  { %v1215_v55 = vpop.f32.mrf.mxu1 }
0x1588   :  { %v2077_v8 = vpop.f32.mrf.mxu1 }
0x1592   :  { %v2190_v57 = vpop.eup %2189 }
0x1593   :  { %1229 = vrot.lane.b32.xlu1 %v2190_v57, %s2287_s7  ;;  %v1220_v58 = vmul.f32 0.5, %v2190_v57 }
0x1595   :  { %v1221_v59 = vadd.f32 0.5, %v1220_v58 }
0x1597   :  { %v1227_v0 = vmul.f32 %v1225_v63, %v1221_v59 }
0x1605   :  { %v1230_v60 = vpop.permute.xlu1 %1229 }
0x1606   :  { %v1232_v10 = vmul.f32 %v1230_v60, %v1221_v59 }
0x1608   :  { %1234 = vrot.lane.b32.xlu1 %v1232_v10, %s2290_s2 }
0x160c   :  { %371 = vrot.lane.b32.xlu1 %v1876_v61, %s2290_s2 }
0x1610   :  { %739 = vrot.lane.b32.xlu1 %v1880_v62, %s2290_s2 }
0x167a   :  { %v1235_v2 = vpop.permute.xlu1 %1234 }
0x167b   :  { %v1237_v3 = vadd.f32 %v1235_v2, %v1227_v0 }
0x167d   :  { %2191 = vtanh.f32 %v1237_v3  ;;  %1245 = vrot.lane.b32.xlu1 %v1237_v3, %s2289_s0 }
0x167e   :  { %v372_v4 = vpop.permute.xlu1 %371 }
0x167f   :  { %375 = vst.msk [vmem:[#allocation3 + $0xc] sm:$0xf] %vm86_vm2, %v372_v4 }
0x1682   :  { %v740_v5 = vpop.permute.xlu1 %739 }
0x1683   :  { %743 = vst.msk [vmem:[#allocation3 + $0x1c] sm:$0xf] %vm86_vm2, %v740_v5 }
0x1686   :  { %v909_v19 = vld [vmem:[#allocation3 + $0xc] sm:$0xf] }
0x1687   :  { %2035 = vmatmul.mubr.msk.bf16.vlgmr.msra.gmra.mxu0 %vm72_vm0, %v909_v19 }
0x1688   :  { %2047 = vmatpush3.bf16.msra.mxu0 %v2462_v27  ;;  %2050 = vmatprep.mubr.msk.bf16.mxu0 %vm2292_vm1, %v2291_v9 }
0x1689   :  { %2048 = vmatprep.subr.bf16.mxu0 %v2291_v9 }
0x168a   :  { %v2192_v6 = vpop.eup %2191  ;;  %v1093_v1 = vld [vmem:[#allocation3 + $0x1c] sm:$0xf] }
0x168b   :  { %1240 = vrot.lane.b32.xlu0 %v2192_v6, %s2287_s7 }
0x168c   :  { %2049 = vmatpush3.bf16.msra.mxu0 %v2469_v28 }
0x168d   :  { %2062 = vmatprep.subr.bf16.mxu0 %v2291_v9 }
0x168f   :  { %555 = vrot.lane.b32.xlu0 %v1878_v7, %s2290_s2 }
0x16ef   :  { %v1246_v43 = vpop.permute.xlu1 %1245 }
0x16f0   :  { %1248 = vst.msk [vmem:[#allocation5] sm:$0xff] %vm72_vm0, %v1246_v43 }
0x16f7   :  { %v1304_v11 = vld [vmem:[#allocation5] sm:$0xff] }
0x16f8   :  { %1306 = vrot.lane.b32.xlu1 %v1304_v11, %s2290_s2 }
0x16fd   :  { %v1241_v13 = vpop.permute.xlu0 %1240 }
0x16fe   :  { %v1243_v14 = vmul.f32 %v1241_v13, %v1221_v59 }
0x1700   :  { %1250 = vrot.lane.b32.xlu0 %v1243_v14, %s2290_s2 }
0x1701   :  { %v556_v15 = vpop.permute.xlu0 %555 }
0x1702   :  { %559 = vst.msk [vmem:[#allocation3 + $0x14] sm:$0xf] %vm86_vm2, %v556_v15 }
0x1709   :  { %v1001_v56 = vld [vmem:[#allocation3 + $0x14] sm:$0xf] }
0x170a   :  { %2051 = vmatmul.mubr.msk.bf16.vlgmr.msra.gmra.mxu0 %vm72_vm0, %v1001_v56 }
0x170b   :  { %2063 = vmatpush3.bf16.msra.mxu0 %v2462_v27  ;;  %2066 = vmatprep.mubr.msk.bf16.mxu0 %vm2292_vm1, %v2291_v9 }
0x170c   :  { %2064 = vmatprep.subr.bf16.mxu0 %v2291_v9 }
0x170f   :  { %2065 = vmatpush3.bf16.msra.mxu0 %v2469_v28 }
0x1710   :  { %2078 = vmatprep.subr.bf16.mxu0 %v2291_v9 }
0x1712   :  { %2067 = vmatmul.mubr.msk.bf16.vlgmr.msra.gmra.mxu0 %vm72_vm0, %v1093_v1 }
0x1713   :  { %2079 = vmatpush3.bf16.msra.mxu0 %v2554_v24  ;;  %2082 = vmatprep.mubr.msk.bf16.mxu0 %vm2292_vm1, %v2291_v9 }
0x1714   :  { %2080 = vmatprep.subr.bf16.mxu0 %v2291_v9 }
0x1717   :  { %2081 = vmatpush3.bf16.msra.mxu0 %v2561_v26 }
0x1718   :  { %2094 = vmatprep.subr.bf16.mxu0 %v2291_v9 }
0x1747   :  { %v947_v27 = vpop.f32.mrf.mxu0 }
0x1748   :  { %v948_v60 = vadd.f32 %v2503_v40, %v947_v27 }
0x1749   :  { %v2036_v16 = vpop.f32.mrf.mxu0 }
0x174b   :  { %v950_v17 = vpop.f32.mrf.mxu0 }
0x174d   :  { %v2037_v28 = vpop.f32.mrf.mxu0 }
0x174e   :  { %v994_v28 = vadd.f32 %v2503_v40, %v2579_v38 }
0x176a   :  { %v1307_v49 = vpop.permute.xlu1 %1306 }
0x1772   :  { %v1251_v33 = vpop.permute.xlu0 %1250 }
0x1773   :  { %1253 = vst.msk [vmem:[#allocation4] sm:$0xff] %vm72_vm0, %v1251_v33 }
0x177a   :  { %v1255_v18 = vld [vmem:[#allocation4] sm:$0xff] }
0x177b   :  { %v1256_v20 = vpack.c.bf16 %v1255_v18, %v1255_v18 }
0x177d   :  { %2083 = vmatmul.mubr.msk.bf16.vlgmr.msra.gmra.mxu0 %vm72_vm0, %v1256_v20 }
0x177e   :  { %2095 = vmatpush3.bf16.msra.mxu0 %v2554_v24  ;;  %2098 = vmatprep.mubr.msk.bf16.mxu0 %vm2292_vm1, %v2291_v9 }
0x177f   :  { %2096 = vmatprep.subr.bf16.mxu0 %v2291_v9 }
0x1782   :  { %2097 = vmatpush3.bf16.msra.mxu0 %v2561_v26 }
0x1783   :  { %2110 = vmatprep.subr.bf16.mxu0 %v2291_v9 }
0x17ca   :  { %v2632_v21 = vpop.f32.mrf.mxu0 }
0x17cc   :  { %v2052_v22 = vpop.f32.mrf.mxu0 }
0x17ce   :  { %v1042_v23 = vpop.f32.mrf.mxu0 }
0x17d0   :  { %v2053_v25 = vpop.f32.mrf.mxu0 }
0x17d2   :  { %v2634_v29 = vpop.f32.mrf.mxu0 }
0x17d4   :  { %v2068_v30 = vpop.f32.mrf.mxu0 }
0x17d6   :  { %v1134_v31 = vpop.f32.mrf.mxu0 }
0x17d8   :  { %v2069_v32 = vpop.f32.mrf.mxu0 }
0x183d   :  { %v1294_v12 = vpop.f32.mrf.mxu0 }
0x183e   :  { %v1300_v36 = vadd.f32 %v1294_v12, %v902_v35 }
0x183f   :  { %v2084_v37 = vpop.f32.mrf.mxu0 }
0x1840   :  { %2193 = vtanh.f32 %v1300_v36 }
0x1841   :  { %v1297_v39 = vpop.f32.mrf.mxu0 }
0x1843   :  { %v2085_v41 = vpop.f32.mrf.mxu0 }
0x184d   :  { %v2194_v42 = vpop.eup %2193 }
0x184e   :  { %1311 = vrot.lane.b32.xlu0 %v2194_v42, %s2287_s7  ;;  %v1302_v44 = vmul.f32 0.5, %v2194_v42 }
0x1850   :  { %v1303_v45 = vadd.f32 0.5, %v1302_v44 }
0x1852   :  { %v1309_v50 = vmul.f32 %v1307_v49, %v1303_v45 }
0x18c0   :  { %v1312_v46 = vpop.permute.xlu0 %1311 }
0x18c1   :  { %v1314_v48 = vmul.f32 %v1312_v46, %v1303_v45 }
0x18c3   :  { %1316 = vrot.lane.b32.xlu0 %v1314_v48, %s2290_s2 }
0x1935   :  { %v1317_v51 = vpop.permute.xlu0 %1316 }
0x1936   :  { %v1319_v52 = vadd.f32 %v1317_v51, %v1309_v50  ;;  %v1040_v50 = vadd.f32 %v2503_v40, %v2632_v21 }
0x1938   :  { %2195 = vtanh.f32 %v1319_v52 }
0x1945   :  { %v2196_v34 = vpop.eup %2195 }
0x1946   :  { %1322 = vrot.lane.b32.xlu1 %v2196_v34, %s2287_s7 }
0x194a   :  { %1327 = vrot.lane.b32.xlu1 %v1319_v52, %s2289_s0 }
0x19b8   :  { %v1323_v53 = vpop.permute.xlu1 %1322 }
0x19b9   :  { %v1325_v54 = vmul.f32 %v1323_v53, %v1303_v45 }
0x19bb   :  { %1332 = vrot.lane.b32.xlu0 %v1325_v54, %s2290_s2 }
0x19bc   :  { %v1328_v55 = vpop.permute.xlu1 %1327 }
0x19bd   :  { %1330 = vst.msk [vmem:[#allocation5] sm:$0xff] %vm72_vm0, %v1328_v55 }
0x19c4   :  { %v1386_v8 = vld [vmem:[#allocation5] sm:$0xff] }
0x19c5   :  { %1388 = vrot.lane.b32.xlu1 %v1386_v8, %s2290_s2 }
0x1a2d   :  { %v1333_v57 = vpop.permute.xlu0 %1332 }
0x1a2e   :  { %1335 = vst.msk [vmem:[#allocation4] sm:$0xff] %vm72_vm0, %v1333_v57 }
0x1a35   :  { %v1337_v58 = vld [vmem:[#allocation4] sm:$0xff] }
0x1a36   :  { %v1338_v59 = vpack.c.bf16 %v1337_v58, %v1337_v58 }
0x1a37   :  { %v1389_v6 = vpop.permute.xlu1 %1388 }
0x1a38   :  { %2091 = vmatmul.mubr.msk.bf16.vlgmr.msra.gmra.mxu1 %vm72_vm0, %v1338_v59 }
0x1a39   :  { %2103 = vmatpush3.bf16.msra.mxu1 %v2554_v24  ;;  %2106 = vmatprep.mubr.msk.bf16.mxu1 %vm2292_vm1, %v2291_v9 }
0x1a3a   :  { %2104 = vmatprep.subr.bf16.mxu1 %v2291_v9 }
0x1a3d   :  { %2105 = vmatpush3.bf16.msra.mxu1 %v2561_v26 }
0x1a3e   :  { %2118 = vmatprep.subr.bf16.mxu1 %v2291_v9 }
0x1af8   :  { %v1376_v10 = vpop.f32.mrf.mxu1 }
0x1af9   :  { %v1382_v61 = vadd.f32 %v1376_v10, %v948_v60 }
0x1afa   :  { %v2092_v62 = vpop.f32.mrf.mxu1 }
0x1afb   :  { %2197 = vtanh.f32 %v1382_v61 }
0x1afc   :  { %v1379_v63 = vpop.f32.mrf.mxu1 }
0x1afe   :  { %v2093_v0 = vpop.f32.mrf.mxu1 }
0x1b08   :  { %v2198_v2 = vpop.eup %2197 }
0x1b09   :  { %1393 = vrot.lane.b32.xlu0 %v2198_v2, %s2287_s7  ;;  %v1384_v3 = vmul.f32 0.5, %v2198_v2 }
0x1b0b   :  { %v1385_v4 = vadd.f32 0.5, %v1384_v3 }
0x1b0d   :  { %v1391_v7 = vmul.f32 %v1389_v6, %v1385_v4 }
0x1b7b   :  { %v1394_v5 = vpop.permute.xlu0 %1393 }
0x1b7c   :  { %v1396_v19 = vmul.f32 %v1394_v5, %v1385_v4  ;;  %v1086_v5 = vadd.f32 %v2503_v40, %v2581_v47 }
0x1b7e   :  { %1398 = vrot.lane.b32.xlu0 %v1396_v19, %s2290_s2 }
0x1bf0   :  { %v1399_v43 = vpop.permute.xlu0 %1398 }
0x1bf1   :  { %v1401_v11 = vadd.f32 %v1399_v43, %v1391_v7 }
0x1bf3   :  { %2199 = vtanh.f32 %v1401_v11 }
0x1c00   :  { %v2200_v13 = vpop.eup %2199 }
0x1c01   :  { %1404 = vrot.lane.b32.xlu1 %v2200_v13, %s2287_s7 }
0x1c05   :  { %1409 = vrot.lane.b32.xlu1 %v1401_v11, %s2289_s0 }
0x1c73   :  { %v1405_v14 = vpop.permute.xlu1 %1404 }
0x1c74   :  { %v1407_v15 = vmul.f32 %v1405_v14, %v1385_v4 }
0x1c76   :  { %1414 = vrot.lane.b32.xlu0 %v1407_v15, %s2290_s2 }
0x1c77   :  { %v1410_v56 = vpop.permute.xlu1 %1409 }
0x1c78   :  { %1412 = vst.msk [vmem:[#allocation5] sm:$0xff] %vm72_vm0, %v1410_v56 }
0x1c7f   :  { %v1468_v1 = vld [vmem:[#allocation5] sm:$0xff] }
0x1c80   :  { %1470 = vrot.lane.b32.xlu1 %v1468_v1, %s2290_s2 }
0x1ce8   :  { %v1415_v27 = vpop.permute.xlu0 %1414 }
0x1ce9   :  { %1417 = vst.msk [vmem:[#allocation4] sm:$0xff] %vm72_vm0, %v1415_v27 }
0x1cf0   :  { %v1419_v16 = vld [vmem:[#allocation4] sm:$0xff] }
0x1cf1   :  { %v1420_v17 = vpack.c.bf16 %v1419_v16, %v1419_v16 }
0x1cf2   :  { %v1471_v12 = vpop.permute.xlu1 %1470 }
0x1cf3   :  { %2099 = vmatmul.mubr.msk.bf16.vlgmr.msra.gmra.mxu0 %vm72_vm0, %v1420_v17 }
0x1cf4   :  { %2111 = vmatpush3.bf16.msra.mxu0 %v2554_v24  ;;  %2114 = vmatprep.mubr.msk.bf16.mxu0 %vm2292_vm1, %v2291_v9 }
0x1cf5   :  { %2112 = vmatprep.subr.bf16.mxu0 %v2291_v9 }
0x1cf8   :  { %2113 = vmatpush3.bf16.msra.mxu0 %v2561_v26 }
0x1cf9   :  { %2126 = vmatprep.subr.bf16.mxu0 %v2291_v9 }
0x1db3   :  { %v1458_v33 = vpop.f32.mrf.mxu0 }
0x1db4   :  { %v1464_v18 = vadd.f32 %v1458_v33, %v994_v28 }
0x1db5   :  { %v2100_v20 = vpop.f32.mrf.mxu0 }
0x1db6   :  { %2201 = vtanh.f32 %v1464_v18 }
0x1db7   :  { %v1461_v22 = vpop.f32.mrf.mxu0 }
0x1db9   :  { %v2101_v23 = vpop.f32.mrf.mxu0 }
0x1dc3   :  { %v2202_v25 = vpop.eup %2201 }
0x1dc4   :  { %1475 = vrot.lane.b32.xlu0 %v2202_v25, %s2287_s7  ;;  %v1466_v30 = vmul.f32 0.5, %v2202_v25 }
0x1dc6   :  { %v1467_v31 = vadd.f32 0.5, %v1466_v30 }
0x1dc8   :  { %v1473_v36 = vmul.f32 %v1471_v12, %v1467_v31 }
0x1e36   :  { %v1476_v32 = vpop.permute.xlu0 %1475 }
0x1e37   :  { %v1478_v35 = vmul.f32 %v1476_v32, %v1467_v31 }
0x1e39   :  { %1480 = vrot.lane.b32.xlu0 %v1478_v35, %s2290_s2 }
0x1eab   :  { %v1481_v37 = vpop.permute.xlu0 %1480 }
0x1eac   :  { %v1483_v39 = vadd.f32 %v1481_v37, %v1473_v36 }
0x1eae   :  { %2203 = vtanh.f32 %v1483_v39 }
0x1ebb   :  { %v2204_v38 = vpop.eup %2203 }
0x1ebc   :  { %1486 = vrot.lane.b32.xlu1 %v2204_v38, %s2287_s7 }
0x1ec0   :  { %1491 = vrot.lane.b32.xlu1 %v1483_v39, %s2289_s0 }
0x1f2e   :  { %v1487_v41 = vpop.permute.xlu1 %1486 }
0x1f2f   :  { %v1489_v42 = vmul.f32 %v1487_v41, %v1467_v31  ;;  %v1132_v31 = vadd.f32 %v2503_v40, %v2634_v29  ;;  %v2151_v29 = vld [vmem:[%s2736_s4 + $0x8] sm:$0xff]  }
0x1f31   :  { %1496 = vrot.lane.b32.xlu0 %v1489_v42, %s2290_s2 }
0x1f32   :  { %v1492_v44 = vpop.permute.xlu1 %1491 }
0x1f33   :  { %1494 = vst.msk [vmem:[#allocation5] sm:$0xff] %vm72_vm0, %v1492_v44 }
0x1f3a   :  { %v1550_v45 = vld [vmem:[#allocation5] sm:$0xff] }
0x1f3b   :  { %1552 = vrot.lane.b32.xlu1 %v1550_v45, %s2290_s2 }
0x1fa3   :  { %v1497_v46 = vpop.permute.xlu0 %1496 }
0x1fa4   :  { %1499 = vst.msk [vmem:[#allocation4] sm:$0xff] %vm72_vm0, %v1497_v46 }
0x1fab   :  { %v1501_v48 = vld [vmem:[#allocation4] sm:$0xff] }
0x1fac   :  { %v1502_v49 = vpack.c.bf16 %v1501_v48, %v1501_v48 }
0x1fad   :  { %v1553_v59 = vpop.permute.xlu1 %1552 }
0x1fae   :  { %2107 = vmatmul.mubr.msk.bf16.vlgmr.msra.gmra.mxu1 %vm72_vm0, %v1502_v49 }
0x1faf   :  { %2119 = vmatpush3.bf16.msra.mxu1 %v2554_v24  ;;  %2122 = vmatprep.mubr.msk.bf16.mxu1 %vm2292_vm1, %v2291_v9 }
0x1fb0   :  { %2120 = vmatprep.subr.bf16.mxu1 %v2291_v9 }
0x1fb3   :  { %2121 = vmatpush3.bf16.msra.mxu1 %v2561_v26 }
0x206e   :  { %v1540_v51 = vpop.f32.mrf.mxu1 }
0x206f   :  { %v1546_v52 = vadd.f32 %v1540_v51, %v1040_v50  ;;  %v2152_v50 = vld [vmem:[%s2736_s4] sm:$0xff]   ;;  %s2293_s4 = smov [#allocation11]  }
0x2070   :  { %v2108_v34 = vpop.f32.mrf.mxu1  ;;  %s1822_s21 = sshll.u32 %s2293_s4, 4  ;;  %s1823_s21 = int_to_ptr.vmem [resolvable:$true] %s1822_s21 }
0x2071   :  { %2205 = vtanh.f32 %v1546_v52  ;;  %s2257_s22 = scalar_lea.vmem %s1823_s21, 128  ;;  %p2262_p11 = scmp.lt.s32.totalorder %s1823_s21, %s1823_s21 }
0x2072   :  { %v1543_v53 = vpop.f32.mrf.mxu1  ;;  %p2258_p10 = scmp.ne.s32.totalorder %s1823_s21, %s2257_s22  ;;  %p2263_p12 = scmp.lt.s32.totalorder %s2257_s22, %s2257_s22 }
0x2074   :  { %v2109_v54 = vpop.f32.mrf.mxu1  ;;  %p2264_p13 = por %p2263_p12, %p2262_p11 }
0x2076   :  { %p2265_p0 = pnand %p2264_p13, %p2258_p10 }
0x207e   :  { %v2206_v55 = vpop.eup %2205 }
0x207f   :  { %1557 = vrot.lane.b32.xlu0 %v2206_v55, %s2287_s7  ;;  %v1548_v24 = vmul.f32 0.5, %v2206_v55 }
0x2081   :  { %v1549_v8 = vadd.f32 0.5, %v1548_v24  ;;  %v1869_v24 = vld [vmem:[%s2737_s5] ss:$0 sm:$0xff] }
0x2083   :  { %v1555_v26 = vmul.f32 %v1553_v59, %v1549_v8 }
0x20f1   :  { %v1558_v57 = vpop.permute.xlu0 %1557 }
0x20f2   :  { %v1560_v58 = vmul.f32 %v1558_v57, %v1549_v8 }
0x20f4   :  { %1562 = vrot.lane.b32.xlu0 %v1560_v58, %s2290_s2 }
0x2166   :  { %v1563_v60 = vpop.permute.xlu0 %1562 }
0x2167   :  { %v1565_v10 = vadd.f32 %v1563_v60, %v1555_v26 }
0x2169   :  { %2207 = vtanh.f32 %v1565_v10 }
0x2176   :  { %v2208_v21 = vpop.eup %2207 }
0x2177   :  { %1568 = vrot.lane.b32.xlu1 %v2208_v21, %s2287_s7 }
0x217b   :  { %1573 = vrot.lane.b32.xlu1 %v1565_v10, %s2289_s0 }
0x21e9   :  { %v1569_v61 = vpop.permute.xlu1 %1568 }
0x21ea   :  { %v1571_v62 = vmul.f32 %v1569_v61, %v1549_v8 }
0x21ec   :  { %1578 = vrot.lane.b32.xlu0 %v1571_v62, %s2290_s2 }
0x21ed   :  { %v1574_v63 = vpop.permute.xlu1 %1573 }
0x21ee   :  { %1576 = vst.msk [vmem:[#allocation5] sm:$0xff] %vm72_vm0, %v1574_v63 }
0x21f5   :  { %v1632_v0 = vld [vmem:[#allocation5] sm:$0xff] }
0x21f6   :  { %1634 = vrot.lane.b32.xlu1 %v1632_v0, %s2290_s2 }
0x225e   :  { %v1579_v2 = vpop.permute.xlu0 %1578 }
0x225f   :  { %1581 = vst.msk [vmem:[#allocation4] sm:$0xff] %vm72_vm0, %v1579_v2 }
0x2266   :  { %v1583_v3 = vld [vmem:[#allocation4] sm:$0xff] }
0x2267   :  { %v1584_v4 = vpack.c.bf16 %v1583_v3, %v1583_v3 }
0x2268   :  { %v1635_v27 = vpop.permute.xlu1 %1634 }
0x2269   :  { %2115 = vmatmul.mubr.msk.bf16.vlgmr.msra.gmra.mxu0 %vm72_vm0, %v1584_v4 }
0x226a   :  { %2130 = vmatprep.mubr.msk.bf16.mxu0 %vm2292_vm1, %v2291_v9  ;;  %2127 = vmatpush3.bf16.msra.mxu0 %v2151_v29 }
0x226b   :  { %2128 = vmatprep.subr.bf16.mxu0 %v2291_v9 }
0x226e   :  { %2129 = vmatpush3.bf16.msra.mxu0 %v2152_v50 }
0x2329   :  { %v1622_v19 = vpop.f32.mrf.mxu0 }
0x232a   :  { %v1628_v6 = vadd.f32 %v1622_v19, %v1086_v5 }
0x232b   :  { %v2116_v7 = vpop.f32.mrf.mxu0 }
0x232c   :  { %2209 = vtanh.f32 %v1628_v6 }
0x232d   :  { %v1625_v43 = vpop.f32.mrf.mxu0 }
0x232f   :  { %v2117_v11 = vpop.f32.mrf.mxu0 }
0x2339   :  { %v2210_v13 = vpop.eup %2209 }
0x233a   :  { %1639 = vrot.lane.b32.xlu0 %v2210_v13, %s2287_s7  ;;  %v1630_v14 = vmul.f32 0.5, %v2210_v13 }
0x233c   :  { %v1631_v15 = vadd.f32 0.5, %v1630_v14 }
0x233e   :  { %v1637_v16 = vmul.f32 %v1635_v27, %v1631_v15 }
0x23ac   :  { %v1640_v56 = vpop.permute.xlu0 %1639 }
0x23ad   :  { %v1642_v1 = vmul.f32 %v1640_v56, %v1631_v15 }
0x23af   :  { %1644 = vrot.lane.b32.xlu0 %v1642_v1, %s2290_s2 }
0x2421   :  { %v1645_v17 = vpop.permute.xlu0 %1644 }
0x2422   :  { %v1647_v28 = vadd.f32 %v1645_v17, %v1637_v16 }
0x2424   :  { %2211 = vtanh.f32 %v1647_v28 }
0x2431   :  { %v2212_v47 = vpop.eup %2211 }
0x2432   :  { %1650 = vrot.lane.b32.xlu1 %v2212_v47, %s2287_s7 }
0x2436   :  { %1655 = vrot.lane.b32.xlu1 %v1647_v28, %s2289_s0 }
0x24a4   :  { %v1651_v33 = vpop.permute.xlu1 %1650 }
0x24a5   :  { %v1653_v18 = vmul.f32 %v1651_v33, %v1631_v15 }
0x24a7   :  { %1660 = vrot.lane.b32.xlu0 %v1653_v18, %s2290_s2 }
0x24a8   :  { %v1656_v20 = vpop.permute.xlu1 %1655 }
0x24a9   :  { %1658 = vst.msk [vmem:[#allocation5] sm:$0xff] %vm72_vm0, %v1656_v20 }
0x24b0   :  { %v1714_v22 = vld [vmem:[#allocation5] sm:$0xff] }
0x24b1   :  { %1716 = vrot.lane.b32.xlu1 %v1714_v22, %s2290_s2 }
0x2519   :  { %v1661_v23 = vpop.permute.xlu0 %1660 }
0x251a   :  { %1663 = vst.msk [vmem:[#allocation4] sm:$0xff] %vm72_vm0, %v1661_v23 }
0x2521   :  { %v1665_v25 = vld [vmem:[#allocation4] sm:$0xff] }
0x2522   :  { %v1666_v30 = vpack.c.bf16 %v1665_v25, %v1665_v25 }
0x2523   :  { %v1717_v45 = vpop.permute.xlu1 %1716 }
0x2524   :  { %2123 = vmatmul.mubr.msk.bf16.vlgmr.msra.gmra.mxu1 %vm72_vm0, %v1666_v30 }
0x25e4   :  { %v1704_v32 = vpop.f32.mrf.mxu1 }
0x25e5   :  { %v1710_v35 = vadd.f32 %v1704_v32, %v1132_v31 }
0x25e6   :  { %v2124_v12 = vpop.f32.mrf.mxu1 }
0x25e7   :  { %2213 = vtanh.f32 %v1710_v35 }
0x25e8   :  { %v1707_v36 = vpop.f32.mrf.mxu1 }
0x25ea   :  { %v2125_v37 = vpop.f32.mrf.mxu1 }
0x25f4   :  { %v2214_v39 = vpop.eup %2213 }
0x25f5   :  { %1721 = vrot.lane.b32.xlu0 %v2214_v39, %s2287_s7  ;;  %v1712_v38 = vmul.f32 0.5, %v2214_v39 }
0x25f7   :  { %v1713_v41 = vadd.f32 0.5, %v1712_v38 }
0x25f9   :  { %v1719_v46 = vmul.f32 %v1717_v45, %v1713_v41 }
0x2667   :  { %v1722_v42 = vpop.permute.xlu0 %1721 }
0x2668   :  { %v1724_v44 = vmul.f32 %v1722_v42, %v1713_v41 }
0x266a   :  { %1726 = vrot.lane.b32.xlu0 %v1724_v44, %s2290_s2 }
0x26dc   :  { %v1727_v48 = vpop.permute.xlu0 %1726 }
0x26dd   :  { %v1729_v49 = vadd.f32 %v1727_v48, %v1719_v46 }
0x26df   :  { %2215 = vtanh.f32 %v1729_v49 }
0x26ec   :  { %v2216_v40 = vpop.eup %2215 }
0x26ed   :  { %1732 = vrot.lane.b32.xlu1 %v2216_v40, %s2287_s7 }
0x26f1   :  { %1737 = vrot.lane.b32.xlu1 %v1729_v49, %s2289_s0 }
0x275f   :  { %v1733_v51 = vpop.permute.xlu1 %1732 }
0x2760   :  { %v1735_v52 = vmul.f32 %v1733_v51, %v1713_v41 }
0x2762   :  { %1742 = vrot.lane.b32.xlu0 %v1735_v52, %s2290_s2 }
0x2763   :  { %v1738_v34 = vpop.permute.xlu1 %1737 }
0x2764   :  { %1740 = vst.msk [vmem:[#allocation5] sm:$0xff] %vm72_vm0, %v1738_v34 }
0x27d4   :  { %v1743_v53 = vpop.permute.xlu0 %1742 }
0x27d5   :  { %1745 = vst.msk [vmem:[#allocation4] sm:$0xff] %vm72_vm0, %v1743_v53 }
0x27dc   :  { %v1746_v54 = vld [vmem:[#allocation4] sm:$0xff] }
0x27dd   :  { %v1747_v55 = vpack.c.bf16 %v1746_v54, %v1746_v54 }
0x27df   :  { %2131 = vmatmul.mubr.msk.bf16.vlgmr.msra.gmra.mxu0 %vm72_vm0, %v1747_v55 }
0x289f   :  { %v1808_v9 = vpop.f32.mrf.mxu0 }
0x28a0   :  { %v1809_v8 = vadd.f32 %v1869_v24, %v1808_v9 }
0x28a1   :  { %v2132_v57 = vpop.f32.mrf.mxu0 }
0x28a2   :  { %1815 = vst.msk [vmem:[#allocation11] sm:$0xff] %vm1814_vm3, %v1809_v8 }
0x28a3   :  { %v1811_v58 = vpop.f32.mrf.mxu0 }
0x28a4   :  { %2268 = shalt.err (!%p2265_p0)
}
0x28a5   :  { %1825 = dma.vmem_to_hbm [thread:$0]  %s1823_s21, 128, %s2738_s6, [#allocation8]   ;;  %v2133_v59 = vpop.f32.mrf.mxu0 }
0x28a6   :  { %2281 = dma.done.wait [#allocation8], 128  }
0x28a7   :  { %2282 = vsyncadd [#allocation8], 4294967168 }
0x28a8   :  { %1829 = vsyncpa [#allocation7], 1 }
0x28a9   :  { %1830 = vsyncpa [#allocation10], 1 }
0x28aa   :  { %1831 = vsyncpa [#allocation8], 1 }

</bundles_post_ra>
